<compile_context>
chip_gen: v6e
topology: v6e:2x2x1
jax: 0.10.0
libtpu: 0.0.40
codegen_flags: <defaults>
</compile_context>

<pallas_src>
import jax
import jax.numpy as jnp
from jax import lax
from jax.experimental import pallas as pl
from jax.experimental.pallas import tpu as pltpu


def _round_up(v, m):
    return ((v + m - 1) // m) * m


# ----------------------------- Pallas kernel -------------------------------

def _qfunc_fused_kernel(x_ref, a_ref, wenc_ref, benc_ref, w1e_ref, w1a_ref,
                        b1_ref, w2_ref, b2_ref, w3_ref, b3_ref, o_ref):
    """Fused: enc = relu(x @ w_enc + b_enc)                      (MXU)
              h1  = relu(enc @ w1_enc + act @ w1_act + b1)       (MXU + VPU)
              h2  = relu(h1 @ w2 + b2)                           (MXU)
              q   = w3 . h2^T + b3  -> lane-dense [1, TB] row    (MXU)"""
    # Encoder matmul: bf16 operands (no-op cast if the producer already feeds
    # bf16 states), f32 accumulation on the MXU.
    x_bf = x_ref[...].astype(jnp.bfloat16)                       # [TB, D]
    enc = jnp.dot(x_bf, wenc_ref[...],
                  preferred_element_type=jnp.float32)            # [TB, ENC]
    enc = jnp.maximum(enc + benc_ref[...], 0.0)                  # padded cols stay 0

    # First dense layer: encoder part on MXU; the 2-wide action part stays on
    # the VPU as outer-product adds.
    # TODO(synk): only revisit this loop if profiling ever shows VPU/XLU slot
    #             pressure (review: free filler while the kernel is DMA-bound).
    h1 = jnp.dot(enc.astype(jnp.bfloat16), w1e_ref[...],
                 preferred_element_type=jnp.float32)             # [TB, H1]
    a = a_ref[...].astype(jnp.float32)                           # [TB, A]
    for j in range(a_ref.shape[1]):                              # A == 2, static
        h1 = h1 + a[:, j:j + 1] * w1a_ref[j:j + 1, :]
    h1 = jnp.maximum(h1 + b1_ref[...], 0.0)

    # Second dense layer.
    h2 = jnp.dot(h1.astype(jnp.bfloat16), w2_ref[...],
                 preferred_element_type=jnp.float32)             # [TB, H2]
    h2 = jnp.maximum(h2 + b2_ref[...], 0.0)

    # Final Linear(128, 1): contract the last dims of both operands (trans-B
    # matmul) so the MXU emits the result directly as a lane-dense [1, TB]
    # row -- no masked 1-lane stores, no column->row relayout.
    q_row = lax.dot_general(
        w3_ref[...].astype(jnp.bfloat16),                        # [1, H2]
        h2.astype(jnp.bfloat16),                                 # [TB, H2]
        dimension_numbers=(((1,), (1,)), ((), ())),
        preferred_element_type=jnp.float32)                      # [1, TB]
    q_row = q_row + b3_ref[...]                                  # [1,1] broadcast
    o_ref[...] = q_row.reshape(1, 1, -1).astype(o_ref.dtype)


# ------------------------------ JAX wrapper ---------------------------------

def _make_in_specs(TB, D, A, ENC, H1, H2, single_buffer_weights):
    batched = lambda i: (i, 0)
    const = lambda i: (0, 0)
    wkw = {"pipeline_mode": pl.Buffered(1)} if single_buffer_weights else {}
    w = lambda shape: pl.BlockSpec(shape, const, **wkw)   # grid-invariant weights
    return [
        pl.BlockSpec((TB, D), batched),      # x        (streamed per tile)
        pl.BlockSpec((TB, A), batched),      # actions  (streamed per tile)
        w((D, ENC)),                         # w_enc  bf16 (padded cols)
        w((1, ENC)),                         # b_enc  f32  (padded)
        w((ENC, H1)),                        # w1_enc bf16 (padded rows)
        w((A, H1)),                          # w1_act f32
        w((1, H1)),                          # b1     f32
        w((H1, H2)),                         # w2     bf16
        w((1, H2)),                          # b2     f32
        w((1, H2)),                          # w3 row f32
        w((1, 1)),                           # b3     f32
    ]


def qfunction_forward(states, actions, params):
    """Reproduces Qfunction.forward(states, actions) -> [B, 1]."""
    B = states.shape[0]
    # Keep the producer's dtype for states (f32 or bf16): the bf16 cast happens
    # inside the kernel, fused with the load -- no standalone HBM cast pass.
    x = states.reshape(B, -1)                              # [B, C*H*W]
    act = actions.reshape(B, -1).astype(jnp.float32)       # [B, A]  (tiny)

    D, A = x.shape[1], act.shape[1]
    ENC = params["w_enc"].shape[1]                         # 256 (140 padded)
    H1 = params["w1e"].shape[1]                            # 128
    H2 = params["w2"].shape[1]                             # 128

    # Batch tile: large tiles amortize the ~0.35us/step overhead (this kernel
    # is HBM/overhead-bound on the x stream); cap at 512 rows, keep a multiple
    # of 16 (safe sublane packing for f32 and bf16 inputs), and aim for >= 2
    # grid steps so both v7x TensorCores get work on medium batches.
    TB = max(16, min(512, _round_up(pl.cdiv(B, 2), 16)))
    num_tiles = pl.cdiv(B, TB)

    args = (x, act, params["w_enc"], params["b_enc"], params["w1e"],
            params["w1a"], params["b1"], params["w2"], params["b2"],
            params["w3"], params["b3"])

    def run(single_buffer_weights):
        return pl.pallas_call(
            _qfunc_fused_kernel,
            # Lane-dense output: one [1, TB] row per batch tile.
            out_shape=jax.ShapeDtypeStruct((num_tiles, 1, TB), jnp.float32),
            grid=(num_tiles,),
            in_specs=_make_in_specs(TB, D, A, ENC, H1, H2,
                                    single_buffer_weights),
            out_specs=pl.BlockSpec((1, 1, TB), lambda i: (i, 0, 0)),
            compiler_params=pltpu.CompilerParams(
                dimension_semantics=("parallel",),
                vmem_limit_bytes=48 * 1024 * 1024),   # v7x-safe (64 MiB phys)
        )(*args)

    try:
        out = run(single_buffer_weights=True)    # invariant weights: 1 buffer
    except Exception:
        # TODO(synk): drop this fallback once pl.Buffered(1) single-buffering of
        #             grid-invariant operands is guaranteed by the deployed jax.
        out = run(single_buffer_weights=False)

    # [num_tiles, 1, TB] lane-dense rows -> [B, 1] (drop padded tail rows).
    return out.reshape(num_tiles * TB)[:B].reshape(B, 1)


def init_params(key, state_flat_dim, enc_dim=140, act_dim=2, h1=128, h2=128,
                enc_pad=256):
    """Deterministic synthetic parameters (shapes from Qfunction.__init__),
    pre-padded / pre-split into the kernel's 128-aligned layout."""
    ks = jax.random.split(key, 8)

    def lin(kw, kb, fan_in, fan_out):
        bound = 1.0 / jnp.sqrt(jnp.float32(fan_in))
        w = jax.random.uniform(kw, (fan_in, fan_out), jnp.float32, -bound, bound)
        b = jax.random.uniform(kb, (1, fan_out), jnp.float32, -bound, bound)
        return w, b

    w_enc, b_enc = lin(ks[0], ks[1], state_flat_dim, enc_dim)
    w1, b1 = lin(ks[2], ks[3], enc_dim + act_dim, h1)     # nn.Linear(142, 128)
    w2, b2 = lin(ks[4], ks[5], h1, h2)                    # nn.Linear(128, 128)
    w3, b3 = lin(ks[6], ks[7], h2, 1)                     # nn.Linear(128, 1)

    # Pad the encoder output axis 140 -> 256 (zero cols / zero rows => exact).
    w_enc_p = jnp.zeros((state_flat_dim, enc_pad), jnp.float32)
    w_enc_p = w_enc_p.at[:, :enc_dim].set(w_enc)
    b_enc_p = jnp.zeros((1, enc_pad), jnp.float32).at[:, :enc_dim].set(b_enc)

    # Split w1 -> encoder part (padded, MXU/bf16) + action part (VPU/f32).
    w1e = jnp.zeros((enc_pad, h1), jnp.float32).at[:enc_dim, :].set(w1[:enc_dim])
    w1a = w1[enc_dim:]                                    # [act_dim, h1]

    return dict(
        w_enc=w_enc_p.astype(jnp.bfloat16), b_enc=b_enc_p,
        w1e=w1e.astype(jnp.bfloat16), w1a=w1a, b1=b1,
        w2=w2.astype(jnp.bfloat16), b2=b2,
        w3=w3.T,                                          # [1, h2] f32
        b3=b3,                                            # [1, 1]  f32
    )


# ------------------------------ reference check ------------------------------

def qfunction_ref(states, actions, p):
    """Pure-JAX reference mirroring the kernel numerics (bf16 matmul operands,
    f32 accumulation, f32 elementwise).  NOTE: bf16 MXU operands mean up to
    ~1e-2 relative deviation vs a pure-f32 PyTorch Qfunction."""
    B = states.shape[0]
    x = states.reshape(B, -1)
    act = actions.reshape(B, -1).astype(jnp.float32)

    def mm(a, w):
        return lax.dot(a.astype(jnp.bfloat16), w.astype(jnp.bfloat16),
                       preferred_element_type=jnp.float32)

    enc = jnp.maximum(mm(x, p["w_enc"]) + p["b_enc"], 0.0)
    h1 = mm(enc, p["w1e"])
    for j in range(act.shape[1]):
        h1 = h1 + act[:, j:j + 1] * p["w1a"][j:j + 1, :]
    h1 = jnp.maximum(h1 + p["b1"], 0.0)
    h2 = jnp.maximum(mm(h1, p["w2"]) + p["b2"], 0.0)
    return mm(h2, p["w3"].T) + p["b3"]


if __name__ == "__main__":
    key = jax.random.PRNGKey(0)
    k_states, k_actions, k_params, k_s2, k_a2 = jax.random.split(key, 5)

    B, C, H, W = 2, 4, 16, 16       # states: NCHW
    A = 2                           # action dim -> 140 + 2 = 142

    states = jax.random.normal(k_states, (B, C, H, W), jnp.float32)
    actions = jax.random.normal(k_actions, (B, A), jnp.float32)
    params = init_params(k_params, state_flat_dim=C * H * W, enc_dim=140,
                         act_dim=A)

    q = jax.block_until_ready(qfunction_forward(states, actions, params))
    q_ref = qfunction_ref(states, actions, params)
    assert q.shape == (B, 1), q.shape
    assert jnp.allclose(q, q_ref, atol=1e-3, rtol=1e-3), (q, q_ref)

    # Multi-tile + partial-tile path (exercises the lane-dense output layout
    # and the padded-tail trimming).
    B2 = 37
    states2 = jax.random.normal(k_s2, (B2, C, H, W), jnp.float32)
    actions2 = jax.random.normal(k_a2, (B2, A), jnp.float32)
    q2 = jax.block_until_ready(qfunction_forward(states2, actions2, params))
    q2_ref = qfunction_ref(states2, actions2, params)
    assert q2.shape == (B2, 1), q2.shape
    assert jnp.allclose(q2, q2_ref, atol=1e-3, rtol=1e-3), (q2, q2_ref)

    print("KERNEL_OK")
</pallas_src>

<mosaic_0001>
module attributes {stable_mosaic.version = 11 : i64} {
  func.func @_qfunc_fused_kernel(%arg0: i32, %arg1: memref<16x1024xf32, #tpu.memory_space<vmem>>, %arg2: memref<16x2xf32, #tpu.memory_space<vmem>>, %arg3: memref<1024x256xbf16, #tpu.memory_space<vmem>>, %arg4: memref<1x256xf32, #tpu.memory_space<vmem>>, %arg5: memref<256x128xbf16, #tpu.memory_space<vmem>>, %arg6: memref<2x128xf32, #tpu.memory_space<vmem>>, %arg7: memref<1x128xf32, #tpu.memory_space<vmem>>, %arg8: memref<128x128xbf16, #tpu.memory_space<vmem>>, %arg9: memref<1x128xf32, #tpu.memory_space<vmem>>, %arg10: memref<1x128xf32, #tpu.memory_space<vmem>>, %arg11: memref<1x1xf32, #tpu.memory_space<vmem>>, %arg12: memref<1x1x16xf32, #tpu.memory_space<vmem>>) attributes {dimension_semantics = [#tpu.dimension_semantics<parallel>], iteration_bounds = array<i64: 1>, scalar_prefetch = 0 : i64, scratch_operands = 0 : i64, tpu.core_type = #tpu.core_type<tc>, window_params = [{transform_indices = @transform_0, window_bounds = array<i64: 16, 1024>}, {transform_indices = @transform_1, window_bounds = array<i64: 16, 2>}, {pipeline_mode = #tpu.pipeline_mode<synchronous>, transform_indices = @transform_2, window_bounds = array<i64: 1024, 256>}, {pipeline_mode = #tpu.pipeline_mode<synchronous>, transform_indices = @transform_3, window_bounds = array<i64: 1, 256>}, {pipeline_mode = #tpu.pipeline_mode<synchronous>, transform_indices = @transform_4, window_bounds = array<i64: 256, 128>}, {pipeline_mode = #tpu.pipeline_mode<synchronous>, transform_indices = @transform_5, window_bounds = array<i64: 2, 128>}, {pipeline_mode = #tpu.pipeline_mode<synchronous>, transform_indices = @transform_6, window_bounds = array<i64: 1, 128>}, {pipeline_mode = #tpu.pipeline_mode<synchronous>, transform_indices = @transform_7, window_bounds = array<i64: 128, 128>}, {pipeline_mode = #tpu.pipeline_mode<synchronous>, transform_indices = @transform_8, window_bounds = array<i64: 1, 128>}, {pipeline_mode = #tpu.pipeline_mode<synchronous>, transform_indices = @transform_9, window_bounds = array<i64: 1, 128>}, {pipeline_mode = #tpu.pipeline_mode<synchronous>, transform_indices = @transform_10, window_bounds = array<i64: 1, 1>}, {transform_indices = @transform_11, window_bounds = array<i64: 1, 1, 16>}]} {
    %c0 = arith.constant 0 : index
    %c0_0 = arith.constant 0 : index
    %0 = vector.load %arg1[%c0, %c0_0] : memref<16x1024xf32, #tpu.memory_space<vmem>>, vector<16x1024xf32>
    %1 = arith.truncf %0 : vector<16x1024xf32> to vector<16x1024xbf16>
    %c0_1 = arith.constant 0 : index
    %c0_2 = arith.constant 0 : index
    %2 = vector.load %arg3[%c0_1, %c0_2] : memref<1024x256xbf16, #tpu.memory_space<vmem>>, vector<1024x256xbf16>
    %cst = arith.constant dense<0.000000e+00> : vector<16x256xf32>
    %3 = tpu.matmul %1, %2, %cst {dimension_numbers = #tpu.dot_dimension_numbers<[1], [0], [0], [1], [0, 0, 1, 1], [], []>} : vector<16x1024xbf16>, vector<1024x256xbf16>, vector<16x256xf32> -> vector<16x256xf32>
    %c0_3 = arith.constant 0 : index
    %c0_4 = arith.constant 0 : index
    %4 = vector.load %arg4[%c0_3, %c0_4] : memref<1x256xf32, #tpu.memory_space<vmem>>, vector<1x256xf32>
    %5 = vector.broadcast %4 : vector<1x256xf32> to vector<16x256xf32>
    %6 = arith.addf %3, %5 : vector<16x256xf32>
    %cst_5 = arith.constant 0.000000e+00 : f32
    %7 = vector.broadcast %cst_5 : f32 to vector<16x256xf32>
    %8 = arith.maximumf %6, %7 : vector<16x256xf32>
    %9 = arith.truncf %8 : vector<16x256xf32> to vector<16x256xbf16>
    %c0_6 = arith.constant 0 : index
    %c0_7 = arith.constant 0 : index
    %10 = vector.load %arg5[%c0_6, %c0_7] : memref<256x128xbf16, #tpu.memory_space<vmem>>, vector<256x128xbf16>
    %cst_8 = arith.constant dense<0.000000e+00> : vector<16x128xf32>
    %11 = tpu.matmul %9, %10, %cst_8 {dimension_numbers = #tpu.dot_dimension_numbers<[1], [0], [0], [1], [0, 0, 1, 1], [], []>} : vector<16x256xbf16>, vector<256x128xbf16>, vector<16x128xf32> -> vector<16x128xf32>
    %c0_9 = arith.constant 0 : index
    %c0_10 = arith.constant 0 : index
    %12 = vector.load %arg2[%c0_9, %c0_10] : memref<16x2xf32, #tpu.memory_space<vmem>>, vector<16x2xf32>
    %13 = vector.extract_strided_slice %12 {offsets = [0, 0], sizes = [16, 1], strides = [1, 1]} : vector<16x2xf32> to vector<16x1xf32>
    %c0_11 = arith.constant 0 : index
    %c0_12 = arith.constant 0 : index
    %14 = vector.load %arg6[%c0_11, %c0_12] : memref<2x128xf32, #tpu.memory_space<vmem>>, vector<1x128xf32>
    %15 = vector.broadcast %13 : vector<16x1xf32> to vector<16x128xf32>
    %16 = vector.broadcast %14 : vector<1x128xf32> to vector<16x128xf32>
    %17 = arith.mulf %15, %16 : vector<16x128xf32>
    %18 = arith.addf %11, %17 : vector<16x128xf32>
    %19 = vector.extract_strided_slice %12 {offsets = [0, 1], sizes = [16, 1], strides = [1, 1]} : vector<16x2xf32> to vector<16x1xf32>
    %c1 = arith.constant 1 : index
    %c0_13 = arith.constant 0 : index
    %20 = vector.load %arg6[%c1, %c0_13] : memref<2x128xf32, #tpu.memory_space<vmem>>, vector<1x128xf32>
    %21 = vector.broadcast %19 : vector<16x1xf32> to vector<16x128xf32>
    %22 = vector.broadcast %20 : vector<1x128xf32> to vector<16x128xf32>
    %23 = arith.mulf %21, %22 : vector<16x128xf32>
    %24 = arith.addf %18, %23 : vector<16x128xf32>
    %c0_14 = arith.constant 0 : index
    %c0_15 = arith.constant 0 : index
    %25 = vector.load %arg7[%c0_14, %c0_15] : memref<1x128xf32, #tpu.memory_space<vmem>>, vector<1x128xf32>
    %26 = vector.broadcast %25 : vector<1x128xf32> to vector<16x128xf32>
    %27 = arith.addf %24, %26 : vector<16x128xf32>
    %cst_16 = arith.constant 0.000000e+00 : f32
    %28 = vector.broadcast %cst_16 : f32 to vector<16x128xf32>
    %29 = arith.maximumf %27, %28 : vector<16x128xf32>
    %30 = arith.truncf %29 : vector<16x128xf32> to vector<16x128xbf16>
    %c0_17 = arith.constant 0 : index
    %c0_18 = arith.constant 0 : index
    %31 = vector.load %arg8[%c0_17, %c0_18] : memref<128x128xbf16, #tpu.memory_space<vmem>>, vector<128x128xbf16>
    %cst_19 = arith.constant dense<0.000000e+00> : vector<16x128xf32>
    %32 = tpu.matmul %30, %31, %cst_19 {dimension_numbers = #tpu.dot_dimension_numbers<[1], [0], [0], [1], [0, 0, 1, 1], [], []>} : vector<16x128xbf16>, vector<128x128xbf16>, vector<16x128xf32> -> vector<16x128xf32>
    %c0_20 = arith.constant 0 : index
    %c0_21 = arith.constant 0 : index
    %33 = vector.load %arg9[%c0_20, %c0_21] : memref<1x128xf32, #tpu.memory_space<vmem>>, vector<1x128xf32>
    %34 = vector.broadcast %33 : vector<1x128xf32> to vector<16x128xf32>
    %35 = arith.addf %32, %34 : vector<16x128xf32>
    %cst_22 = arith.constant 0.000000e+00 : f32
    %36 = vector.broadcast %cst_22 : f32 to vector<16x128xf32>
    %37 = arith.maximumf %35, %36 : vector<16x128xf32>
    %c0_23 = arith.constant 0 : index
    %c0_24 = arith.constant 0 : index
    %38 = vector.load %arg10[%c0_23, %c0_24] : memref<1x128xf32, #tpu.memory_space<vmem>>, vector<1x128xf32>
    %39 = arith.truncf %38 : vector<1x128xf32> to vector<1x128xbf16>
    %40 = arith.truncf %37 : vector<16x128xf32> to vector<16x128xbf16>
    %cst_25 = arith.constant dense<0.000000e+00> : vector<1x16xf32>
    %41 = tpu.matmul %39, %40, %cst_25 {dimension_numbers = #tpu.dot_dimension_numbers<[1], [1], [0], [0], [0, 0, 1, 0], [], []>} : vector<1x128xbf16>, vector<16x128xbf16>, vector<1x16xf32> -> vector<1x16xf32>
    %c0_26 = arith.constant 0 : index
    %c0_27 = arith.constant 0 : index
    %42 = vector.load %arg11[%c0_26, %c0_27] : memref<1x1xf32, #tpu.memory_space<vmem>>, vector<1x1xf32>
    %43 = vector.broadcast %42 : vector<1x1xf32> to vector<1x16xf32>
    %44 = arith.addf %41, %43 : vector<1x16xf32>
    %45 = vector.shape_cast %44 : vector<1x16xf32> to vector<1x1x16xf32>
    %c0_28 = arith.constant 0 : index
    %c0_29 = arith.constant 0 : index
    %c0_30 = arith.constant 0 : index
    %46 = vector.load %arg12[%c0_28, %c0_29, %c0_30] : memref<1x1x16xf32, #tpu.memory_space<vmem>>, vector<1x1x16xf32>
    tpu.vector_store %arg12[%c0_28, %c0_29, %c0_30], %45 {strides = array<i32>} : memref<1x1x16xf32, #tpu.memory_space<vmem>>, vector<1x1x16xf32>,
    return
  }
  func.func @transform_0(%arg0: i32) -> (i32, i32) {
    %c0_i32 = arith.constant 0 : i32
    %c0_i32_0 = arith.constant 0 : i32
    return %arg0, %c0_i32 : i32, i32
  }
  func.func @transform_1(%arg0: i32) -> (i32, i32) {
    %c0_i32 = arith.constant 0 : i32
    %c0_i32_0 = arith.constant 0 : i32
    return %arg0, %c0_i32 : i32, i32
  }
  func.func @transform_2(%arg0: i32) -> (i32, i32) {
    %c0_i32 = arith.constant 0 : i32
    %c0_i32_0 = arith.constant 0 : i32
    %c0_i32_1 = arith.constant 0 : i32
    return %c0_i32, %c0_i32_0 : i32, i32
  }
  func.func @transform_3(%arg0: i32) -> (i32, i32) {
    %c0_i32 = arith.constant 0 : i32
    %c0_i32_0 = arith.constant 0 : i32
    %c0_i32_1 = arith.constant 0 : i32
    return %c0_i32, %c0_i32_0 : i32, i32
  }
  func.func @transform_4(%arg0: i32) -> (i32, i32) {
    %c0_i32 = arith.constant 0 : i32
    %c0_i32_0 = arith.constant 0 : i32
    %c0_i32_1 = arith.constant 0 : i32
    return %c0_i32, %c0_i32_0 : i32, i32
  }
  func.func @transform_5(%arg0: i32) -> (i32, i32) {
    %c0_i32 = arith.constant 0 : i32
    %c0_i32_0 = arith.constant 0 : i32
    %c0_i32_1 = arith.constant 0 : i32
    return %c0_i32, %c0_i32_0 : i32, i32
  }
  func.func @transform_6(%arg0: i32) -> (i32, i32) {
    %c0_i32 = arith.constant 0 : i32
    %c0_i32_0 = arith.constant 0 : i32
    %c0_i32_1 = arith.constant 0 : i32
    return %c0_i32, %c0_i32_0 : i32, i32
  }
  func.func @transform_7(%arg0: i32) -> (i32, i32) {
    %c0_i32 = arith.constant 0 : i32
    %c0_i32_0 = arith.constant 0 : i32
    %c0_i32_1 = arith.constant 0 : i32
    return %c0_i32, %c0_i32_0 : i32, i32
  }
  func.func @transform_8(%arg0: i32) -> (i32, i32) {
    %c0_i32 = arith.constant 0 : i32
    %c0_i32_0 = arith.constant 0 : i32
    %c0_i32_1 = arith.constant 0 : i32
    return %c0_i32, %c0_i32_0 : i32, i32
  }
  func.func @transform_9(%arg0: i32) -> (i32, i32) {
    %c0_i32 = arith.constant 0 : i32
    %c0_i32_0 = arith.constant 0 : i32
    %c0_i32_1 = arith.constant 0 : i32
    return %c0_i32, %c0_i32_0 : i32, i32
  }
  func.func @transform_10(%arg0: i32) -> (i32, i32) {
    %c0_i32 = arith.constant 0 : i32
    %c0_i32_0 = arith.constant 0 : i32
    %c0_i32_1 = arith.constant 0 : i32
    return %c0_i32, %c0_i32_0 : i32, i32
  }
  func.func @transform_11(%arg0: i32) -> (i32, i32, i32) {
    %c0_i32 = arith.constant 0 : i32
    %c0_i32_0 = arith.constant 0 : i32
    %c0_i32_1 = arith.constant 0 : i32
    return %arg0, %c0_i32, %c0_i32_0 : i32, i32, i32
  }
}

module attributes {stable_mosaic.version = 11 : i64} {
  func.func @_qfunc_fused_kernel(%arg0: i32, %arg1: memref<16x1024xf32, #tpu.memory_space<vmem>>, %arg2: memref<16x2xf32, #tpu.memory_space<vmem>>, %arg3: memref<1024x256xbf16, #tpu.memory_space<vmem>>, %arg4: memref<1x256xf32, #tpu.memory_space<vmem>>, %arg5: memref<256x128xbf16, #tpu.memory_space<vmem>>, %arg6: memref<2x128xf32, #tpu.memory_space<vmem>>, %arg7: memref<1x128xf32, #tpu.memory_space<vmem>>, %arg8: memref<128x128xbf16, #tpu.memory_space<vmem>>, %arg9: memref<1x128xf32, #tpu.memory_space<vmem>>, %arg10: memref<1x128xf32, #tpu.memory_space<vmem>>, %arg11: memref<1x1xf32, #tpu.memory_space<vmem>>, %arg12: memref<1x1x16xf32, #tpu.memory_space<vmem>>) attributes {dimension_semantics = [#tpu.dimension_semantics<parallel>], iteration_bounds = array<i64: 1>, scalar_prefetch = 0 : i64, scratch_operands = 0 : i64, tpu.core_type = #tpu.core_type<tc>, window_params = [{transform_indices = @transform_0, window_bounds = array<i64: 16, 1024>}, {transform_indices = @transform_1, window_bounds = array<i64: 16, 2>}, {pipeline_mode = #tpu.pipeline_mode<synchronous>, transform_indices = @transform_2, window_bounds = array<i64: 1024, 256>}, {pipeline_mode = #tpu.pipeline_mode<synchronous>, transform_indices = @transform_3, window_bounds = array<i64: 1, 256>}, {pipeline_mode = #tpu.pipeline_mode<synchronous>, transform_indices = @transform_4, window_bounds = array<i64: 256, 128>}, {pipeline_mode = #tpu.pipeline_mode<synchronous>, transform_indices = @transform_5, window_bounds = array<i64: 2, 128>}, {pipeline_mode = #tpu.pipeline_mode<synchronous>, transform_indices = @transform_6, window_bounds = array<i64: 1, 128>}, {pipeline_mode = #tpu.pipeline_mode<synchronous>, transform_indices = @transform_7, window_bounds = array<i64: 128, 128>}, {pipeline_mode = #tpu.pipeline_mode<synchronous>, transform_indices = @transform_8, window_bounds = array<i64: 1, 128>}, {pipeline_mode = #tpu.pipeline_mode<synchronous>, transform_indices = @transform_9, window_bounds = array<i64: 1, 128>}, {pipeline_mode = #tpu.pipeline_mode<synchronous>, transform_indices = @transform_10, window_bounds = array<i64: 1, 1>}, {transform_indices = @transform_11, window_bounds = array<i64: 1, 1, 16>}]} {
    %c0 = arith.constant 0 : index
    %c0_0 = arith.constant 0 : index
    %0 = vector.load %arg1[%c0, %c0_0] : memref<16x1024xf32, #tpu.memory_space<vmem>>, vector<16x1024xf32>
    %1 = arith.truncf %0 : vector<16x1024xf32> to vector<16x1024xbf16>
    %c0_1 = arith.constant 0 : index
    %c0_2 = arith.constant 0 : index
    %2 = vector.load %arg3[%c0_1, %c0_2] : memref<1024x256xbf16, #tpu.memory_space<vmem>>, vector<1024x256xbf16>
    %cst = arith.constant dense<0.000000e+00> : vector<16x256xf32>
    %3 = tpu.matmul %1, %2, %cst {dimension_numbers = #tpu.dot_dimension_numbers<[1], [0], [0], [1], [0, 0, 1, 1], [], []>} : vector<16x1024xbf16>, vector<1024x256xbf16>, vector<16x256xf32> -> vector<16x256xf32>
    %c0_3 = arith.constant 0 : index
    %c0_4 = arith.constant 0 : index
    %4 = vector.load %arg4[%c0_3, %c0_4] : memref<1x256xf32, #tpu.memory_space<vmem>>, vector<1x256xf32>
    %5 = vector.broadcast %4 : vector<1x256xf32> to vector<16x256xf32>
    %6 = arith.addf %3, %5 : vector<16x256xf32>
    %cst_5 = arith.constant 0.000000e+00 : f32
    %7 = vector.broadcast %cst_5 : f32 to vector<16x256xf32>
    %8 = arith.maximumf %6, %7 : vector<16x256xf32>
    %9 = arith.truncf %8 : vector<16x256xf32> to vector<16x256xbf16>
    %c0_6 = arith.constant 0 : index
    %c0_7 = arith.constant 0 : index
    %10 = vector.load %arg5[%c0_6, %c0_7] : memref<256x128xbf16, #tpu.memory_space<vmem>>, vector<256x128xbf16>
    %cst_8 = arith.constant dense<0.000000e+00> : vector<16x128xf32>
    %11 = tpu.matmul %9, %10, %cst_8 {dimension_numbers = #tpu.dot_dimension_numbers<[1], [0], [0], [1], [0, 0, 1, 1], [], []>} : vector<16x256xbf16>, vector<256x128xbf16>, vector<16x128xf32> -> vector<16x128xf32>
    %c0_9 = arith.constant 0 : index
    %c0_10 = arith.constant 0 : index
    %12 = vector.load %arg2[%c0_9, %c0_10] : memref<16x2xf32, #tpu.memory_space<vmem>>, vector<16x2xf32>
    %13 = vector.extract_strided_slice %12 {offsets = [0, 0], sizes = [16, 1], strides = [1, 1]} : vector<16x2xf32> to vector<16x1xf32>
    %c0_11 = arith.constant 0 : index
    %c0_12 = arith.constant 0 : index
    %14 = vector.load %arg6[%c0_11, %c0_12] : memref<2x128xf32, #tpu.memory_space<vmem>>, vector<1x128xf32>
    %15 = vector.broadcast %13 : vector<16x1xf32> to vector<16x128xf32>
    %16 = vector.broadcast %14 : vector<1x128xf32> to vector<16x128xf32>
    %17 = arith.mulf %15, %16 : vector<16x128xf32>
    %18 = arith.addf %11, %17 : vector<16x128xf32>
    %19 = vector.extract_strided_slice %12 {offsets = [0, 1], sizes = [16, 1], strides = [1, 1]} : vector<16x2xf32> to vector<16x1xf32>
    %c1 = arith.constant 1 : index
    %c0_13 = arith.constant 0 : index
    %20 = vector.load %arg6[%c1, %c0_13] : memref<2x128xf32, #tpu.memory_space<vmem>>, vector<1x128xf32>
    %21 = vector.broadcast %19 : vector<16x1xf32> to vector<16x128xf32>
    %22 = vector.broadcast %20 : vector<1x128xf32> to vector<16x128xf32>
    %23 = arith.mulf %21, %22 : vector<16x128xf32>
    %24 = arith.addf %18, %23 : vector<16x128xf32>
    %c0_14 = arith.constant 0 : index
    %c0_15 = arith.constant 0 : index
    %25 = vector.load %arg7[%c0_14, %c0_15] : memref<1x128xf32, #tpu.memory_space<vmem>>, vector<1x128xf32>
    %26 = vector.broadcast %25 : vector<1x128xf32> to vector<16x128xf32>
    %27 = arith.addf %24, %26 : vector<16x128xf32>
    %cst_16 = arith.constant 0.000000e+00 : f32
    %28 = vector.broadcast %cst_16 : f32 to vector<16x128xf32>
    %29 = arith.maximumf %27, %28 : vector<16x128xf32>
    %30 = arith.truncf %29 : vector<16x128xf32> to vector<16x128xbf16>
    %c0_17 = arith.constant 0 : index
    %c0_18 = arith.constant 0 : index
    %31 = vector.load %arg8[%c0_17, %c0_18] : memref<128x128xbf16, #tpu.memory_space<vmem>>, vector<128x128xbf16>
    %cst_19 = arith.constant dense<0.000000e+00> : vector<16x128xf32>
    %32 = tpu.matmul %30, %31, %cst_19 {dimension_numbers = #tpu.dot_dimension_numbers<[1], [0], [0], [1], [0, 0, 1, 1], [], []>} : vector<16x128xbf16>, vector<128x128xbf16>, vector<16x128xf32> -> vector<16x128xf32>
    %c0_20 = arith.constant 0 : index
    %c0_21 = arith.constant 0 : index
    %33 = vector.load %arg9[%c0_20, %c0_21] : memref<1x128xf32, #tpu.memory_space<vmem>>, vector<1x128xf32>
    %34 = vector.broadcast %33 : vector<1x128xf32> to vector<16x128xf32>
    %35 = arith.addf %32, %34 : vector<16x128xf32>
    %cst_22 = arith.constant 0.000000e+00 : f32
    %36 = vector.broadcast %cst_22 : f32 to vector<16x128xf32>
    %37 = arith.maximumf %35, %36 : vector<16x128xf32>
    %c0_23 = arith.constant 0 : index
    %c0_24 = arith.constant 0 : index
    %38 = vector.load %arg10[%c0_23, %c0_24] : memref<1x128xf32, #tpu.memory_space<vmem>>, vector<1x128xf32>
    %39 = arith.truncf %38 : vector<1x128xf32> to vector<1x128xbf16>
    %40 = arith.truncf %37 : vector<16x128xf32> to vector<16x128xbf16>
    %cst_25 = arith.constant dense<0.000000e+00> : vector<1x16xf32>
    %41 = tpu.matmul %39, %40, %cst_25 {dimension_numbers = #tpu.dot_dimension_numbers<[1], [1], [0], [0], [0, 0, 1, 0], [], []>} : vector<1x128xbf16>, vector<16x128xbf16>, vector<1x16xf32> -> vector<1x16xf32>
    %c0_26 = arith.constant 0 : index
    %c0_27 = arith.constant 0 : index
    %42 = vector.load %arg11[%c0_26, %c0_27] : memref<1x1xf32, #tpu.memory_space<vmem>>, vector<1x1xf32>
    %43 = vector.broadcast %42 : vector<1x1xf32> to vector<1x16xf32>
    %44 = arith.addf %41, %43 : vector<1x16xf32>
    %45 = vector.shape_cast %44 : vector<1x16xf32> to vector<1x1x16xf32>
    %c0_28 = arith.constant 0 : index
    %c0_29 = arith.constant 0 : index
    %c0_30 = arith.constant 0 : index
    %46 = vector.load %arg12[%c0_28, %c0_29, %c0_30] : memref<1x1x16xf32, #tpu.memory_space<vmem>>, vector<1x1x16xf32>
    tpu.vector_store %arg12[%c0_28, %c0_29, %c0_30], %45 {strides = array<i32>} : memref<1x1x16xf32, #tpu.memory_space<vmem>>, vector<1x1x16xf32>,
    return
  }
  func.func @transform_0(%arg0: i32) -> (i32, i32) {
    %c0_i32 = arith.constant 0 : i32
    %c0_i32_0 = arith.constant 0 : i32
    return %arg0, %c0_i32 : i32, i32
  }
  func.func @transform_1(%arg0: i32) -> (i32, i32) {
    %c0_i32 = arith.constant 0 : i32
    %c0_i32_0 = arith.constant 0 : i32
    return %arg0, %c0_i32 : i32, i32
  }
  func.func @transform_2(%arg0: i32) -> (i32, i32) {
    %c0_i32 = arith.constant 0 : i32
    %c0_i32_0 = arith.constant 0 : i32
    %c0_i32_1 = arith.constant 0 : i32
    return %c0_i32, %c0_i32_0 : i32, i32
  }
  func.func @transform_3(%arg0: i32) -> (i32, i32) {
    %c0_i32 = arith.constant 0 : i32
    %c0_i32_0 = arith.constant 0 : i32
    %c0_i32_1 = arith.constant 0 : i32
    return %c0_i32, %c0_i32_0 : i32, i32
  }
  func.func @transform_4(%arg0: i32) -> (i32, i32) {
    %c0_i32 = arith.constant 0 : i32
    %c0_i32_0 = arith.constant 0 : i32
    %c0_i32_1 = arith.constant 0 : i32
    return %c0_i32, %c0_i32_0 : i32, i32
  }
  func.func @transform_5(%arg0: i32) -> (i32, i32) {
    %c0_i32 = arith.constant 0 : i32
    %c0_i32_0 = arith.constant 0 : i32
    %c0_i32_1 = arith.constant 0 : i32
    return %c0_i32, %c0_i32_0 : i32, i32
  }
  func.func @transform_6(%arg0: i32) -> (i32, i32) {
    %c0_i32 = arith.constant 0 : i32
    %c0_i32_0 = arith.constant 0 : i32
    %c0_i32_1 = arith.constant 0 : i32
    return %c0_i32, %c0_i32_0 : i32, i32
  }
  func.func @transform_7(%arg0: i32) -> (i32, i32) {
    %c0_i32 = arith.constant 0 : i32
    %c0_i32_0 = arith.constant 0 : i32
    %c0_i32_1 = arith.constant 0 : i32
    return %c0_i32, %c0_i32_0 : i32, i32
  }
  func.func @transform_8(%arg0: i32) -> (i32, i32) {
    %c0_i32 = arith.constant 0 : i32
    %c0_i32_0 = arith.constant 0 : i32
    %c0_i32_1 = arith.constant 0 : i32
    return %c0_i32, %c0_i32_0 : i32, i32
  }
  func.func @transform_9(%arg0: i32) -> (i32, i32) {
    %c0_i32 = arith.constant 0 : i32
    %c0_i32_0 = arith.constant 0 : i32
    %c0_i32_1 = arith.constant 0 : i32
    return %c0_i32, %c0_i32_0 : i32, i32
  }
  func.func @transform_10(%arg0: i32) -> (i32, i32) {
    %c0_i32 = arith.constant 0 : i32
    %c0_i32_0 = arith.constant 0 : i32
    %c0_i32_1 = arith.constant 0 : i32
    return %c0_i32, %c0_i32_0 : i32, i32
  }
  func.func @transform_11(%arg0: i32) -> (i32, i32, i32) {
    %c0_i32 = arith.constant 0 : i32
    %c0_i32_0 = arith.constant 0 : i32
    %c0_i32_1 = arith.constant 0 : i32
    return %arg0, %c0_i32, %c0_i32_0 : i32, i32, i32
  }
}

</mosaic_0001>

<bundles_post_ra>
// kernel: tpu_custom_call.1
= control target key start
LH: loop header
LB: loop body
LE: loop exit
PB: predicated region body
PF: predicated region fallthrough
CT: control target
= control target key end

     0   :  { %s2427_s0 = inlined_call_operand.hbm [shape: f32[2,1024], index: 0, kind: input, shape index: {}]   ;;  %s2428_s1 = inlined_call_operand.vmem [shape: f32[2,2], index: 1, kind: input, shape index: {}]   ;;  %s2429_s2 = inlined_call_operand.hbm [shape: bf16[1024,256], index: 2, kind: input, shape index: {}]   ;;  %s2430_s3 = inlined_call_operand.vmem [shape: f32[1,256], index: 3, kind: input, shape index: {}]   ;;  %s2431_s4 = inlined_call_operand.hbm [shape: bf16[256,128], index: 4, kind: input, shape index: {}]   ;;  %s2432_s5 = inlined_call_operand.vmem [shape: f32[2,128], index: 5, kind: input, shape index: {}]   ;;  %s2433_s6 = inlined_call_operand.vmem [shape: f32[1,128], index: 6, kind: input, shape index: {}]   ;;  %s2434_s7 = inlined_call_operand.hbm [shape: bf16[128,128], index: 7, kind: input, shape index: {}]   ;;  %s2435_s8 = inlined_call_operand.vmem [shape: f32[1,128], index: 8, kind: input, shape index: {}]   ;;  %s2436_s9 = inlined_call_operand.vmem [shape: f32[1,128], index: 9, kind: input, shape index: {}]   ;;  %s2437_s10 = inlined_call_operand.<no memory space> [shape: f32[1,1], index: 10, kind: input, shape index: {}]   ;;  %s2438_s11 = inlined_call_operand.hbm [shape: f32[1,1,16], index: 11, kind: output, shape index: {}]  }
   0x1   :  { %v16_v0 = vstv %s2437_s10 }
   0x2   :  { %17 = vst [vmem:[#allocation2] sm:$0x1] %v16_v0 }
   0x3   :  { %18 = vsyncpa [#allocation4], 0 }
   0x4   :  { %19 = vsyncpa [#allocation7], 0 }
   0x5   :  { %20 = vsyncpa [#allocation10], 0 }
   0x6   :  { %21 = vsyncpa [#allocation5], 0 }
   0x7   :  { %26 = vsyncadd [#allocation4], 1792  ;;  %s2239_s19 = smov [#allocation6]  }
   0x8   :  { %s41_s20 = sshll.u32 %s2239_s19, 4  ;;  %s42_s20 = int_to_ptr.vmem [resolvable:$true] %s41_s20 }
   0x9   :  { %s2139_s21 = scalar_lea.vmem %s42_s20, 16384  ;;  %p2144_p1 = scmp.lt.s32.totalorder %s42_s20, %s42_s20 }
   0xa   :  { %p2140_p0 = scmp.ne.s32.totalorder %s42_s20, %s2139_s21  ;;  %p2145_p2 = scmp.lt.s32.totalorder %s2139_s21, %s2139_s21 }
   0xc   :  { %p2146_p3 = por %p2145_p2, %p2144_p1 }
   0xe   :  { %p2147_p4 = pnand %p2146_p3, %p2140_p0 }
  0x10   :  { %2150 = shalt.err (!%p2147_p4)
}
  0x11   :  { %s2240_s22 = smov 128   ;;  %s2241_s23 = smov 8  }
  0x12   :  { %47 = dma.hbm_to_vmem [thread:$0]  %s2429_s2, 16384, %s42_s20, [#allocation7], %s2240_s22, %s2240_s22, %s2241_s23  }
  0x13   :  { %s2242_s25 = smov [#allocation3]  }
  0x14   :  { %s27_s26 = sshll.u32 %s2242_s25, 4  ;;  %s28_s26 = int_to_ptr.vmem [resolvable:$true] %s27_s26 }
  0x15   :  { %s2159_s27 = scalar_lea.vmem %s28_s26, 256  ;;  %s2163_s28 = scalar_lea.vmem %s28_s26, 2048 }
  0x16   :  { %p2160_p5 = scmp.ne.s32.totalorder %s28_s26, %s2159_s27  ;;  %p2164_p6 = scmp.lt.s32.totalorder %s28_s26, %s28_s26 }
  0x17   :  { %p2165_p7 = scmp.lt.s32.totalorder %s2163_s28, %s2159_s27 }
  0x19   :  { %p2166_p8 = por %p2165_p7, %p2164_p6 }
  0x1b   :  { %p2167_p9 = pnand %p2166_p8, %p2160_p5 }
  0x1d   :  { %2170 = shalt.err (!%p2167_p9)
}
  0x1e   :  { %s2243_s29 = smov 256   ;;  %s2244_s30 = smov 16  }
  0x1f   :  { %33 = dma.hbm_to_vmem [thread:$0]  %s2427_s0, 256, %s28_s26, [#allocation4], %s2243_s29, %s2243_s29, %s2244_s30  }
  0x20   :  { %s2245_s14 = smov [#allocation8]  }
  0x21   :  { %s55_s15 = sshll.u32 %s2245_s14, 4  ;;  %s56_s15 = int_to_ptr.vmem [resolvable:$true] %s55_s15 }
  0x22   :  { %s2179_s2 = scalar_lea.vmem %s56_s15, 2048  ;;  %p2184_p11 = scmp.lt.s32.totalorder %s56_s15, %s56_s15 }
  0x23   :  { %p2180_p10 = scmp.ne.s32.totalorder %s56_s15, %s2179_s2  ;;  %p2185_p12 = scmp.lt.s32.totalorder %s2179_s2, %s2179_s2 }
  0x25   :  { %p2186_p13 = por %p2185_p12, %p2184_p11 }
  0x27   :  { %p2187_p0 = pnand %p2186_p13, %p2180_p10 }
  0x29   :  { %2190 = shalt.err (!%p2187_p0)
}
  0x2a   :  { %s2246_s16 = smov 64   ;;  %s2247_s17 = smov 4  }
  0x2b   :  { %61 = dma.hbm_to_vmem [thread:$0]  %s2431_s4, 2048, %s56_s15, [#allocation7], %s2246_s16, %s2246_s16, %s2247_s17  }
  0x2c   :  { %s2248_s20 = smov [#allocation9]  }
  0x2d   :  { %s71_s21 = sshll.u32 %s2248_s20, 4  ;;  %s72_s21 = int_to_ptr.vmem [resolvable:$true] %s71_s21 }
  0x2e   :  { %s2199_s0 = scalar_lea.vmem %s72_s21, 1024  ;;  %p2204_p2 = scmp.lt.s32.totalorder %s72_s21, %s72_s21 }
  0x2f   :  { %p2200_p1 = scmp.ne.s32.totalorder %s72_s21, %s2199_s0  ;;  %p2205_p3 = scmp.lt.s32.totalorder %s2199_s0, %s2199_s0 }
  0x31   :  { %p2206_p4 = por %p2205_p3, %p2204_p2 }
  0x33   :  { %p2207_p5 = pnand %p2206_p4, %p2200_p1 }
  0x35   :  { %2210 = shalt.err (!%p2207_p5)
}
  0x36   :  { %77 = dma.hbm_to_vmem [thread:$0]  %s2434_s7, 1024, %s72_s21, [#allocation10], %s2246_s16, %s2246_s16, %s2247_s17  }
  0x37   :  { %2231 = dma.done.wait [#allocation4], 2048  }
  0x38   :  { %2232 = vsyncadd [#allocation4], 4294965248 }
  0x39   :  { %2233 = dma.done.wait [#allocation7], 18432  }
  0x3a   :  { %2234 = vsyncadd [#allocation7], 4294948864 }
  0x3b   :  { %2235 = dma.done.wait [#allocation10], 1024  }
  0x3c   :  { %2236 = vsyncadd [#allocation10], 4294966272  ;;  %v1891_v1 = vld [vmem:[#allocation6 + $0x74] ss:$8 sps:$4 sm:$0xff]   ;;  %v1895_v3 = vld [vmem:[#allocation6 + $0x70] ss:$8 sps:$4 sm:$0xff]   ;;  %v136_v42 = vlaneseq }
  0x3d   :  { %v1893_v2 = vld [vmem:[#allocation6 + $0x174] ss:$8 sps:$4 sm:$0xff]   ;;  %1077 = vmatprep.subr.bf16.mxu0 %v1891_v1  ;;  %v1896_v4 = vld [vmem:[#allocation6 + $0x170] ss:$8 sps:$4 sm:$0xff]   ;;  %v1897_v5 = vld [vmem:[#allocation6 + $0x64] ss:$8 sps:$4 sm:$0xff]  }
  0x3e   :  { %1120 = vmatprep.subr.bf16.mxu1 %v1893_v2  ;;  %1078 = vmatpush1.bf16.msra.mxu0 %v1895_v3  ;;  %v1899_v6 = vld [vmem:[#allocation6 + $0x164] ss:$8 sps:$4 sm:$0xff]   ;;  %v1901_v7 = vld [vmem:[#allocation6 + $0x60] ss:$8 sps:$4 sm:$0xff]   ;;  %v1903_v9 = vld [vmem:[#allocation6 + $0x54] ss:$8 sps:$4 sm:$0xff]  }
  0x3f   :  { %1121 = vmatpush1.bf16.msra.mxu1 %v1896_v4  ;;  %1079 = vmatprep.subr.bf16.mxu0 %v1897_v5  ;;  %v1902_v8 = vld [vmem:[#allocation6 + $0x160] ss:$8 sps:$4 sm:$0xff]   ;;  %v1905_v10 = vld [vmem:[#allocation6 + $0x154] ss:$8 sps:$4 sm:$0xff]   ;;  %v1907_v11 = vld [vmem:[#allocation6 + $0x50] ss:$8 sps:$4 sm:$0xff]  }
  0x40   :  { %1122 = vmatprep.subr.bf16.mxu1 %v1899_v6  ;;  %v1908_v12 = vld [vmem:[#allocation6 + $0x150] ss:$8 sps:$4 sm:$0xff]   ;;  %v1909_v13 = vld [vmem:[#allocation6 + $0x44] ss:$8 sps:$4 sm:$0xff]   ;;  %v1913_v15 = vld [vmem:[#allocation6 + $0x40] ss:$8 sps:$4 sm:$0xff]  }
  0x41   :  { %v1911_v14 = vld [vmem:[#allocation6 + $0x144] ss:$8 sps:$4 sm:$0xff]   ;;  %v1914_v16 = vld [vmem:[#allocation6 + $0x140] ss:$8 sps:$4 sm:$0xff]   ;;  %v1915_v17 = vld [vmem:[#allocation6 + $0x34] ss:$8 sps:$4 sm:$0xff]  }
  0x42   :  { %1080 = vmatpush1.bf16.msra.mxu0 %v1901_v7  ;;  %v1917_v18 = vld [vmem:[#allocation6 + $0x134] ss:$8 sps:$4 sm:$0xff]   ;;  %v1919_v19 = vld [vmem:[#allocation6 + $0x30] ss:$8 sps:$4 sm:$0xff]   ;;  %v1921_v21 = vld [vmem:[#allocation6 + $0x24] ss:$8 sps:$4 sm:$0xff]  }
  0x43   :  { %1123 = vmatpush1.bf16.msra.mxu1 %v1902_v8  ;;  %1081 = vmatprep.subr.bf16.mxu0 %v1903_v9  ;;  %v1920_v20 = vld [vmem:[#allocation6 + $0x130] ss:$8 sps:$4 sm:$0xff]   ;;  %v1923_v22 = vld [vmem:[#allocation6 + $0x124] ss:$8 sps:$4 sm:$0xff]   ;;  %v1925_v23 = vld [vmem:[#allocation6 + $0x20] ss:$8 sps:$4 sm:$0xff]  }
  0x44   :  { %1124 = vmatprep.subr.bf16.mxu1 %v1905_v10  ;;  %v1926_v24 = vld [vmem:[#allocation6 + $0x120] ss:$8 sps:$4 sm:$0xff]   ;;  %v1927_v25 = vld [vmem:[#allocation6 + $0x14] ss:$8 sps:$4 sm:$0xff]   ;;  %v1931_v27 = vld [vmem:[#allocation6 + $0x10] ss:$8 sps:$4 sm:$0xff]  }
  0x45   :  { %v1929_v26 = vld [vmem:[#allocation6 + $0x114] ss:$8 sps:$4 sm:$0xff]   ;;  %v1932_v28 = vld [vmem:[#allocation6 + $0x110] ss:$8 sps:$4 sm:$0xff]   ;;  %v1933_v29 = vld [vmem:[#allocation6 + $0x4] ss:$8 sps:$4 sm:$0xff]  }
  0x46   :  { %1082 = vmatpush1.bf16.msra.mxu0 %v1907_v11  ;;  %v1935_v30 = vld [vmem:[#allocation6 + $0x104] ss:$8 sps:$4 sm:$0xff]   ;;  %v1937_v31 = vld [vmem:[#allocation6] ss:$8 sps:$4 sm:$0xff]   ;;  %v1939_v33 = vld [vmem:[#allocation6 + $0xf4] ss:$8 sps:$4 sm:$0xff]  }
  0x47   :  { %1125 = vmatpush1.bf16.msra.mxu1 %v1908_v12  ;;  %1083 = vmatprep.subr.bf16.mxu0 %v1909_v13  ;;  %v1938_v32 = vld [vmem:[#allocation6 + $0x100] ss:$8 sps:$4 sm:$0xff]   ;;  %v1941_v34 = vld [vmem:[#allocation6 + $0x1f4] ss:$8 sps:$4 sm:$0xff]   ;;  %v1943_v35 = vld [vmem:[#allocation6 + $0xf0] ss:$8 sps:$4 sm:$0xff]  }
  0x48   :  { %1126 = vmatprep.subr.bf16.mxu1 %v1911_v14  ;;  %v1944_v36 = vld [vmem:[#allocation6 + $0x1f0] ss:$8 sps:$4 sm:$0xff]   ;;  %v1945_v37 = vld [vmem:[#allocation6 + $0xe4] ss:$8 sps:$4 sm:$0xff]   ;;  %v1949_v39 = vld [vmem:[#allocation6 + $0xe0] ss:$8 sps:$4 sm:$0xff]  }
  0x49   :  { %v1947_v38 = vld [vmem:[#allocation6 + $0x1e4] ss:$8 sps:$4 sm:$0xff]   ;;  %v2249_v40 = vmov 1983009808   ;;  %v1950_v43 = vld [vmem:[#allocation6 + $0x1e0] ss:$8 sps:$4 sm:$0xff]  }
  0x4a   :  { %1084 = vmatpush1.bf16.msra.mxu0 %v1913_v15  ;;  %v134_v41 = vunpack.c.l.s4 %v2249_v40  ;;  %v1951_v44 = vld [vmem:[#allocation6 + $0xd4] ss:$8 sps:$4 sm:$0xff]   ;;  %v1955_v46 = vld [vmem:[#allocation6 + $0xd0] ss:$8 sps:$4 sm:$0xff]   ;;  %v2330_v49 = vshrl.u32 %v136_v42, 7  ;;  %vm2253_vm0 = vmmov 0  }
  0x4b   :  { %1127 = vmatpush1.bf16.msra.mxu1 %v1914_v16  ;;  %1085 = vmatprep.subr.bf16.mxu0 %v1915_v17  ;;  %v1953_v45 = vld [vmem:[#allocation6 + $0x1d4] ss:$8 sps:$4 sm:$0xff]   ;;  %v1956_v47 = vld [vmem:[#allocation6 + $0x1d0] ss:$8 sps:$4 sm:$0xff]   ;;  %v1957_v50 = vld [vmem:[#allocation6 + $0xc4] ss:$8 sps:$4 sm:$0xff]  }
  0x4c   :  { %1128 = vmatprep.subr.bf16.mxu1 %v1917_v18  ;;  %v135_v48 = vunpack.c.0.s8 %v134_v41  ;;  %v1959_v51 = vld [vmem:[#allocation6 + $0x1c4] ss:$8 sps:$4 sm:$0xff]   ;;  %v1961_v52 = vld [vmem:[#allocation6 + $0xc0] ss:$8 sps:$4 sm:$0xff]   ;;  %v1963_v54 = vld [vmem:[#allocation6 + $0xb4] ss:$8 sps:$4 sm:$0xff]  }
  0x4d   :  { %v1962_v53 = vld [vmem:[#allocation6 + $0x1c0] ss:$8 sps:$4 sm:$0xff]   ;;  %v1965_v55 = vld [vmem:[#allocation6 + $0x1b4] ss:$8 sps:$4 sm:$0xff]   ;;  %v1967_v59 = vld [vmem:[#allocation6 + $0xb0] ss:$8 sps:$4 sm:$0xff]  }
  0x4e   :  { %1086 = vmatpush1.bf16.msra.mxu0 %v1919_v19  ;;  %v2333_v56 = vsub.s32 %v135_v48, %v2330_v49  ;;  %v1987_v57 = vld [vmem:[#allocation3] ss:$16 sps:$4 sm:$0xff]   ;;  %v1995_v63 = vld [vmem:[#allocation3 + $0x4] ss:$16 sps:$4 sm:$0xff]   ;;  %s2254_s14 = smov [#allocation11]   ;;  %vm1639_vm1 = vcmask 122880  }
  0x4f   :  { %1129 = vmatpush1.bf16.msra.mxu1 %v1920_v20  ;;  %1087 = vmatprep.subr.bf16.mxu0 %v1921_v21  ;;  %v1989_v58 = vld [vmem:[#allocation3 + $0x20] ss:$16 sps:$4 sm:$0xff]   ;;  %v1996_v2 = vld [vmem:[#allocation3 + $0x24] ss:$16 sps:$4 sm:$0xff]   ;;  %s1647_s15 = sshll.u32 %s2254_s14, 4  ;;  %s1648_s15 = int_to_ptr.vmem [resolvable:$true] %s1647_s15 }
  0x50   :  { %1130 = vmatprep.subr.bf16.mxu1 %v1923_v22  ;;  %v1968_v60 = vld [vmem:[#allocation6 + $0x1b0] ss:$8 sps:$4 sm:$0xff]   ;;  %v139_v0 = vrot.slane %v1987_v57, %v2333_v56  ;;  %v153_v1 = vrot.slane %v1989_v58, %v2333_v56  ;;  %v1997_v3 = vld [vmem:[#allocation3 + $0x44] ss:$16 sps:$4 sm:$0xff]   ;;  %v146_v8 = vrot.slane %v1995_v63, %v2333_v56  ;;  %v160_v11 = vrot.slane %v1996_v2, %v2333_v56  ;;  %v1973_v15 = vld [vmem:[#allocation6 + $0xa0] ss:$8 sps:$4 sm:$0xff]   ;;  %p2216_p7 = scmp.lt.s32.totalorder %s1648_s15, %s1648_s15 }
  0x51   :  { %v1991_v61 = vld [vmem:[#allocation3 + $0x40] ss:$16 sps:$4 sm:$0xff]   ;;  %v1998_v4 = vld [vmem:[#allocation3 + $0x64] ss:$16 sps:$4 sm:$0xff]   ;;  %v218_v12 = vrot.slane %v1997_v3, %v2333_v56  ;;  %s2215_s2 = scalar_lea.vmem %s1648_s15, 32 }
  0x52   :  { %1088 = vmatpush1.bf16.msra.mxu0 %v1925_v23  ;;  %v1993_v62 = vld [vmem:[#allocation3 + $0x60] ss:$16 sps:$4 sm:$0xff]   ;;  %v1969_v5 = vld [vmem:[#allocation6 + $0xa4] ss:$8 sps:$4 sm:$0xff]   ;;  %v211_v6 = vrot.slane %v1991_v61, %v2333_v56  ;;  %v162_v10 = vcombine.high %v139_v0, %v153_v1  ;;  %v232_v14 = vrot.slane %v1998_v4, %v2333_v56  ;;  %v164_v17 = vcombine.high %v146_v8, %v160_v11  ;;  %v1975_v18 = vld [vmem:[#allocation6 + $0x94] ss:$8 sps:$4 sm:$0xff]  }
  0x53   :  { %1131 = vmatpush1.bf16.msra.mxu1 %v1926_v24  ;;  %1089 = vmatprep.subr.bf16.mxu0 %v1927_v25  ;;  %v225_v7 = vrot.slane %v1993_v62, %v2333_v56  ;;  %v1971_v9 = vld [vmem:[#allocation6 + $0x1a4] ss:$8 sps:$4 sm:$0xff]   ;;  %v1974_v16 = vld [vmem:[#allocation6 + $0x1a0] ss:$8 sps:$4 sm:$0xff]   ;;  %v1977_v21 = vld [vmem:[#allocation6 + $0x194] ss:$8 sps:$4 sm:$0xff]  }
  0x54   :  { %1132 = vmatprep.subr.bf16.mxu1 %v1929_v26  ;;  %v236_v20 = vcombine.high %v218_v12, %v232_v14  ;;  %v1979_v23 = vld [vmem:[#allocation6 + $0x90] ss:$8 sps:$4 sm:$0xff]   ;;  %v1981_v25 = vld [vmem:[#allocation6 + $0x84] ss:$8 sps:$4 sm:$0xff]   ;;  %v2005_v41 = vld [vmem:[#allocation6 + $0x260] ss:$8 sps:$4 sm:$0xff]  }
  0x55   :  { %v234_v13 = vcombine.high %v211_v6, %v225_v7  ;;  %v1980_v24 = vld [vmem:[#allocation6 + $0x190] ss:$8 sps:$4 sm:$0xff]   ;;  %v1983_v26 = vld [vmem:[#allocation6 + $0x184] ss:$8 sps:$4 sm:$0xff]   ;;  %v2008_v42 = vld [vmem:[#allocation6 + $0x360] ss:$8 sps:$4 sm:$0xff]  }
  0x56   :  { %1090 = vmatpush1.bf16.msra.mxu0 %v1931_v27  ;;  %v292_v22 = vpack.c.bf16 %v236_v20, %v164_v17  ;;  %v1985_v27 = vld [vmem:[#allocation6 + $0x80] ss:$8 sps:$4 sm:$0xff]   ;;  %v2010_v40 = vld [vmem:[#allocation6 + $0x364] ss:$8 sps:$4 sm:$0xff]   ;;  %v2037_v61 = vld [vmem:[#allocation6 + $0x214] ss:$8 sps:$4 sm:$0xff]  }
  0x57   :  { %1133 = vmatpush1.bf16.msra.mxu1 %v1932_v28  ;;  %1091 = vmatprep.subr.bf16.mxu0 %v1933_v29  ;;  %v290_v19 = vpack.c.bf16 %v234_v13, %v162_v10  ;;  %v1986_v28 = vld [vmem:[#allocation6 + $0x180] ss:$8 sps:$4 sm:$0xff]   ;;  %v161_v29 = vcombine.low %v139_v0, %v153_v1  ;;  %v2022_v48 = vld [vmem:[#allocation6 + $0x344] ss:$8 sps:$4 sm:$0xff]   ;;  %v2040_v62 = vld [vmem:[#allocation6 + $0x314] ss:$8 sps:$4 sm:$0xff]  }
  0x58   :  { %1134 = vmatprep.subr.bf16.mxu1 %v1935_v30  ;;  %1152 = vmatprep.mubr.bf16.mxu1 %v292_v22  ;;  %v233_v30 = vcombine.low %v211_v6, %v225_v7  ;;  %v2031_v57 = vld [vmem:[#allocation6 + $0x224] ss:$8 sps:$4 sm:$0xff]   ;;  %v2035_v63 = vld [vmem:[#allocation6 + $0x210] ss:$8 sps:$4 sm:$0xff]   ;;  %v2041_v3 = vld [vmem:[#allocation6 + $0x200] ss:$8 sps:$4 sm:$0xff]  }
  0x59   :  { %1109 = vmatprep.mubr.bf16.mxu0 %v290_v19  ;;  %v2034_v58 = vld [vmem:[#allocation6 + $0x324] ss:$8 sps:$4 sm:$0xff]   ;;  %v2038_v0 = vld [vmem:[#allocation6 + $0x310] ss:$8 sps:$4 sm:$0xff]   ;;  %v2044_v4 = vld [vmem:[#allocation6 + $0x300] ss:$8 sps:$4 sm:$0xff]  }
  0x5a   :  { %1092 = vmatpush1.bf16.msra.mxu0 %v1937_v31  ;;  %v163_v31 = vcombine.low %v146_v8, %v160_v11  ;;  %v2043_v1 = vld [vmem:[#allocation6 + $0x204] ss:$8 sps:$4 sm:$0xff]   ;;  %v2052_v6 = vld [vmem:[#allocation6 + $0x3f4] ss:$8 sps:$4 sm:$0xff]   ;;  %v2095_v7 = vld [vmem:[#allocation3 + $0x8] ss:$16 sps:$4 sm:$0xff]  }
  0x5b   :  { %1135 = vmatpush1.bf16.msra.mxu1 %v1938_v32  ;;  %1093 = vmatprep.subr.bf16.mxu0 %v1939_v33  ;;  %v235_v32 = vcombine.low %v218_v12, %v232_v14  ;;  %v2001_v33 = vld [vmem:[#allocation6 + $0x274] ss:$8 sps:$4 sm:$0xff]   ;;  %v2046_v2 = vld [vmem:[#allocation6 + $0x304] ss:$8 sps:$4 sm:$0xff]   ;;  %v2097_v8 = vld [vmem:[#allocation3 + $0x28] ss:$16 sps:$4 sm:$0xff]  }
  0x5c   :  { %1136 = vmatprep.subr.bf16.mxu1 %v1941_v34  ;;  %v2004_v34 = vld [vmem:[#allocation6 + $0x374] ss:$8 sps:$4 sm:$0xff]   ;;  %v2050_v10 = vld [vmem:[#allocation6 + $0x3f0] ss:$8 sps:$4 sm:$0xff]   ;;  %v2055_v14 = vld [vmem:[#allocation6 + $0x2e4] ss:$8 sps:$4 sm:$0xff]  }
  0x5d   :  { %v2099_v11 = vld [vmem:[#allocation3 + $0x48] ss:$16 sps:$4 sm:$0xff]   ;;  %v2103_v13 = vld [vmem:[#allocation3 + $0xc] ss:$16 sps:$4 sm:$0xff]  }
  0x5e   :  { %1094 = vmatpush2.bf16.msra.mxu0 %v1943_v35  ;;  %v289_v35 = vpack.c.bf16 %v233_v30, %v161_v29  ;;  %v2101_v12 = vld [vmem:[#allocation3 + $0x68] ss:$16 sps:$4 sm:$0xff]   ;;  %v2104_v17 = vld [vmem:[#allocation3 + $0x2c] ss:$16 sps:$4 sm:$0xff]  }
  0x5f   :  { %1137 = vmatpush2.bf16.msra.mxu1 %v1944_v36  ;;  %1095 = vmatprep.subr.bf16.mxu0 %v1945_v37  ;;  %v291_v36 = vpack.c.bf16 %v235_v32, %v163_v31  ;;  %v1999_v37 = vld [vmem:[#allocation6 + $0x270] ss:$8 sps:$4 sm:$0xff]   ;;  %v2106_v19 = vld [vmem:[#allocation3 + $0x6c] ss:$16 sps:$4 sm:$0xff]   ;;  %v2353_v22 = vrot.slane %v2101_v12, %v2333_v56 }
  0x60   :  { %1138 = vmatprep.subr.bf16.mxu1 %v1947_v38  ;;  %v2002_v38 = vld [vmem:[#allocation6 + $0x370] ss:$8 sps:$4 sm:$0xff]   ;;  %v2058_v20 = vld [vmem:[#allocation6 + $0x3e4] ss:$8 sps:$4 sm:$0xff]   ;;  %v2369_v30 = vrot.slane %v2106_v19, %v2333_v56  ;;  %v2061_v31 = vld [vmem:[#allocation6 + $0x2d4] ss:$8 sps:$4 sm:$0xff]  }
  0x61   :  { %v2064_v32 = vld [vmem:[#allocation6 + $0x3d4] ss:$8 sps:$4 sm:$0xff]   ;;  %v2250_v19 = vmov 0  }
  0x62   :  { %1096 = vmatpush2.bf16.msra.mxu0 %v1949_v39  ;;  %v2007_v39 = vld [vmem:[#allocation6 + $0x264] ss:$8 sps:$4 sm:$0xff]   ;;  %v2117_v12 = vld [vmem:[#allocation8 + $0x50] sm:$0xff]   ;;  %1889 = vset.pattern.permute.xlu0 %v2250_v19 }
  0x63   :  { %1139 = vmatpush2.bf16.msra.mxu1 %v1950_v43  ;;  %1097 = vmatprep.subr.bf16.mxu0 %v1951_v44  ;;  %v2013_v43 = vld [vmem:[#allocation6 + $0x254] ss:$8 sps:$4 sm:$0xff]  }
  0x64   :  { %1140 = vmatprep.subr.bf16.mxu1 %v1953_v45  ;;  %v2016_v44 = vld [vmem:[#allocation6 + $0x354] ss:$8 sps:$4 sm:$0xff]   ;;  %v2011_v45 = vld [vmem:[#allocation6 + $0x250] ss:$8 sps:$4 sm:$0xff]  }
  0x66   :  { %1098 = vmatpush2.bf16.msra.mxu0 %v1955_v46  ;;  %v2014_v46 = vld [vmem:[#allocation6 + $0x350] ss:$8 sps:$4 sm:$0xff]  }
  0x67   :  { %1141 = vmatpush2.bf16.msra.mxu1 %v1956_v47  ;;  %1099 = vmatprep.subr.bf16.mxu0 %v1957_v50  ;;  %v2019_v47 = vld [vmem:[#allocation6 + $0x244] ss:$8 sps:$4 sm:$0xff]   ;;  %v2017_v50 = vld [vmem:[#allocation6 + $0x240] ss:$8 sps:$4 sm:$0xff]  }
  0x68   :  { %1142 = vmatprep.subr.bf16.mxu1 %v1959_v51  ;;  %v2020_v51 = vld [vmem:[#allocation6 + $0x340] ss:$8 sps:$4 sm:$0xff]  }
  0x6a   :  { %1100 = vmatpush2.bf16.msra.mxu0 %v1961_v52  ;;  %v2025_v52 = vld [vmem:[#allocation6 + $0x234] ss:$8 sps:$4 sm:$0xff]  }
  0x6b   :  { %1143 = vmatpush2.bf16.msra.mxu1 %v1962_v53  ;;  %1101 = vmatprep.subr.bf16.mxu0 %v1963_v54  ;;  %v2028_v53 = vld [vmem:[#allocation6 + $0x334] ss:$8 sps:$4 sm:$0xff]   ;;  %v2023_v54 = vld [vmem:[#allocation6 + $0x230] ss:$8 sps:$4 sm:$0xff]  }
  0x6c   :  { %1144 = vmatprep.subr.bf16.mxu1 %v1965_v55  ;;  %v2026_v55 = vld [vmem:[#allocation6 + $0x330] ss:$8 sps:$4 sm:$0xff]  }
  0x6e   :  { %1102 = vmatpush2.bf16.msra.mxu0 %v1967_v59  ;;  %v2029_v59 = vld [vmem:[#allocation6 + $0x220] ss:$8 sps:$4 sm:$0xff]  }
  0x6f   :  { %1145 = vmatpush2.bf16.msra.mxu1 %v1968_v60  ;;  %1103 = vmatprep.subr.bf16.mxu0 %v1969_v5  ;;  %v2032_v60 = vld [vmem:[#allocation6 + $0x320] ss:$8 sps:$4 sm:$0xff]   ;;  %v2049_v5 = vld [vmem:[#allocation6 + $0x2f4] ss:$8 sps:$4 sm:$0xff]  }
  0x70   :  { %1146 = vmatprep.subr.bf16.mxu1 %v1971_v9  ;;  %v2047_v9 = vld [vmem:[#allocation6 + $0x2f0] ss:$8 sps:$4 sm:$0xff]  }
  0x72   :  { %1104 = vmatpush2.bf16.msra.mxu0 %v1973_v15  ;;  %v2344_v15 = vrot.slane %v2095_v7, %v2333_v56  ;;  %v2112_v7 = vld [vmem:[#allocation8 + $0x28] sm:$0xff]  }
  0x73   :  { %1147 = vmatpush2.bf16.msra.mxu1 %v1974_v16  ;;  %1105 = vmatprep.subr.bf16.mxu0 %v1975_v18  ;;  %v2347_v16 = vrot.slane %v2097_v8, %v2333_v56  ;;  %v2105_v18 = vld [vmem:[#allocation3 + $0x4c] ss:$16 sps:$4 sm:$0xff]   ;;  %v2113_v8 = vld [vmem:[#allocation8 + $0x60] sm:$0xff]  }
  0x74   :  { %1148 = vmatprep.subr.bf16.mxu1 %v1977_v21  ;;  %v2350_v21 = vrot.slane %v2099_v11, %v2333_v56  ;;  %v2116_v11 = vld [vmem:[#allocation8 + $0x18] sm:$0xff]  }
  0x76   :  { %1106 = vmatpush2.bf16.msra.mxu0 %v1979_v23  ;;  %v2356_v23 = vrot.slane %v2103_v13, %v2333_v56  ;;  %v270_v29 = vcombine.high %v2350_v21, %v2353_v22  ;;  %v2118_v13 = vld [vmem:[#allocation8 + $0x10] sm:$0xff]  }
  0x77   :  { %1149 = vmatpush2.bf16.msra.mxu1 %v1980_v24  ;;  %1107 = vmatprep.subr.bf16.mxu0 %v1981_v25  ;;  %v198_v24 = vcombine.high %v2344_v15, %v2347_v16  ;;  %v2361_v25 = vrot.slane %v2104_v17, %v2333_v56  ;;  %v2122_v17 = vld [vmem:[#allocation8] sm:$0xff]  }
  0x78   :  { %1150 = vmatprep.subr.bf16.mxu1 %v1983_v26  ;;  %v2364_v26 = vrot.slane %v2105_v18, %v2333_v56  ;;  %v2070_v56 = vld [vmem:[#allocation6 + $0x3c4] ss:$8 sps:$4 sm:$0xff]  }
  0x79   :  { %v1287_v18 = vld [vmem:[%s2428_s1] sm:$0xff] }
  0x7a   :  { %1108 = vmatpush2.bf16.msra.mxu0 %v1985_v27  ;;  %v2053_v27 = vld [vmem:[#allocation6 + $0x2e0] ss:$8 sps:$4 sm:$0xff]   ;;  %1292 = vperm.xlu0 %1889, %v1287_v18  }
  0x7b   :  { %1151 = vmatpush2.bf16.msra.mxu1 %v1986_v28  ;;  %1163 = vmatprep.subr.bf16.mxu0 %v2001_v33  ;;  %v2056_v28 = vld [vmem:[#allocation6 + $0x3e0] ss:$8 sps:$4 sm:$0xff]   ;;  %v200_v33 = vcombine.high %v2356_v23, %v2361_v25 }
  0x7c   :  { %1206 = vmatprep.subr.bf16.mxu1 %v2004_v34  ;;  %v294_v34 = vpack.c.bf16 %v270_v29, %v198_v24  ;;  %v2124_v24 = vld [vmem:[#allocation9 + $0x30] sm:$0xff]   ;;  %v433_v29 = vsub.s32 1, %v2330_v49 }
  0x7d   :  { %1110 = vmatmul.mubr.bf16.vlgmr.msra.gmra.mxu0 %v289_v35  ;;  %v272_v35 = vcombine.high %v2364_v26, %v2369_v30 }
  0x7e   :  { %1153 = vmatmul.mubr.bf16.vlgmr.msra.gmra.mxu1 %v291_v36  ;;  %1164 = vmatpush1.bf16.msra.mxu0 %v1999_v37  ;;  %v2059_v36 = vld [vmem:[#allocation6 + $0x2d0] ss:$8 sps:$4 sm:$0xff]  }
  0x7f   :  { %1207 = vmatpush1.bf16.msra.mxu1 %v2002_v38  ;;  %1165 = vmatprep.subr.bf16.mxu0 %v2007_v39  ;;  %v2062_v37 = vld [vmem:[#allocation6 + $0x3d0] ss:$8 sps:$4 sm:$0xff]   ;;  %v296_v38 = vpack.c.bf16 %v272_v35, %v200_v33  ;;  %v2067_v39 = vld [vmem:[#allocation6 + $0x2c4] ss:$8 sps:$4 sm:$0xff]  }
  0x80   :  { %1208 = vmatprep.subr.bf16.mxu1 %v2010_v40  ;;  %1195 = vmatprep.mubr.bf16.mxu0 %v294_v34  ;;  %v2065_v40 = vld [vmem:[#allocation6 + $0x2c0] ss:$8 sps:$4 sm:$0xff]  }
  0x81   :  { %1238 = vmatprep.mubr.bf16.mxu1 %v296_v38 }
  0x82   :  { %1166 = vmatpush1.bf16.msra.mxu0 %v2005_v41  ;;  %v2068_v41 = vld [vmem:[#allocation6 + $0x3c0] ss:$8 sps:$4 sm:$0xff]  }
  0x83   :  { %1209 = vmatpush1.bf16.msra.mxu1 %v2008_v42  ;;  %1167 = vmatprep.subr.bf16.mxu0 %v2013_v43  ;;  %v2073_v42 = vld [vmem:[#allocation6 + $0x2b4] ss:$8 sps:$4 sm:$0xff]  }
  0x84   :  { %1210 = vmatprep.subr.bf16.mxu1 %v2016_v44  ;;  %v2076_v43 = vld [vmem:[#allocation6 + $0x3b4] ss:$8 sps:$4 sm:$0xff]   ;;  %v2071_v44 = vld [vmem:[#allocation6 + $0x2b0] ss:$8 sps:$4 sm:$0xff]  }
  0x86   :  { %1168 = vmatpush1.bf16.msra.mxu0 %v2011_v45  ;;  %v2074_v45 = vld [vmem:[#allocation6 + $0x3b0] ss:$8 sps:$4 sm:$0xff]  }
  0x87   :  { %1211 = vmatpush1.bf16.msra.mxu1 %v2014_v46  ;;  %1169 = vmatprep.subr.bf16.mxu0 %v2019_v47  ;;  %v2079_v46 = vld [vmem:[#allocation6 + $0x2a4] ss:$8 sps:$4 sm:$0xff]  }
  0x88   :  { %1212 = vmatprep.subr.bf16.mxu1 %v2022_v48  ;;  %v2082_v47 = vld [vmem:[#allocation6 + $0x3a4] ss:$8 sps:$4 sm:$0xff]   ;;  %v2077_v48 = vld [vmem:[#allocation6 + $0x2a0] ss:$8 sps:$4 sm:$0xff]  }
  0x8a   :  { %1170 = vmatpush1.bf16.msra.mxu0 %v2017_v50  ;;  %v2080_v50 = vld [vmem:[#allocation6 + $0x3a0] ss:$8 sps:$4 sm:$0xff]  }
  0x8b   :  { %1213 = vmatpush1.bf16.msra.mxu1 %v2020_v51  ;;  %1171 = vmatprep.subr.bf16.mxu0 %v2025_v52  ;;  %v2085_v51 = vld [vmem:[#allocation6 + $0x294] ss:$8 sps:$4 sm:$0xff]  }
  0x8c   :  { %1214 = vmatprep.subr.bf16.mxu1 %v2028_v53  ;;  %v2088_v52 = vld [vmem:[#allocation6 + $0x394] ss:$8 sps:$4 sm:$0xff]   ;;  %v2083_v53 = vld [vmem:[#allocation6 + $0x290] ss:$8 sps:$4 sm:$0xff]  }
  0x8e   :  { %1172 = vmatpush1.bf16.msra.mxu0 %v2023_v54  ;;  %v2086_v54 = vld [vmem:[#allocation6 + $0x390] ss:$8 sps:$4 sm:$0xff]  }
  0x8f   :  { %1215 = vmatpush1.bf16.msra.mxu1 %v2026_v55  ;;  %1173 = vmatprep.subr.bf16.mxu0 %v2031_v57  ;;  %v2091_v55 = vld [vmem:[#allocation6 + $0x284] ss:$8 sps:$4 sm:$0xff]  }
  0x90   :  { %1216 = vmatprep.subr.bf16.mxu1 %v2034_v58  ;;  %v2094_v57 = vld [vmem:[#allocation6 + $0x384] ss:$8 sps:$4 sm:$0xff]   ;;  %v197_v58 = vcombine.low %v2344_v15, %v2347_v16 }
  0x91   :  { %v2120_v15 = vld [vmem:[#allocation8 + $0x8] sm:$0xff]   ;;  %v2121_v16 = vld [vmem:[#allocation8 + $0x40] sm:$0xff]  }
  0x92   :  { %1174 = vmatpush1.bf16.msra.mxu0 %v2029_v59  ;;  %v269_v59 = vcombine.low %v2350_v21, %v2353_v22  ;;  %v2123_v21 = vld [vmem:[#allocation9 + $0x38] sm:$0xff]   ;;  %v1288_v22 = vld [vmem:[%s2428_s1 + $0x8] sm:$0xff] }
  0x93   :  { %1217 = vmatpush1.bf16.msra.mxu1 %v2032_v60  ;;  %1175 = vmatprep.subr.bf16.mxu0 %v2037_v61  ;;  %v199_v60 = vcombine.low %v2356_v23, %v2361_v25  ;;  %v271_v61 = vcombine.low %v2364_v26, %v2369_v30  ;;  %v2252_v23 = vmov 0.0   ;;  %v1589_v25 = vld [vmem:[#allocation2] sm:$0x1]  ;;  %v2125_v26 = vld [vmem:[#allocation9 + $0x28] sm:$0xff]  }
  0x94   :  { %1218 = vmatprep.subr.bf16.mxu1 %v2040_v62  ;;  %v2089_v62 = vld [vmem:[#allocation6 + $0x280] ss:$8 sps:$4 sm:$0xff]   ;;  %1297 = vperm.xlu0 %1889, %v1288_v22  }
  0x95   :  { %v425_v30 = vld [vmem:[%s2430_s3] sm:$0x3] }
  0x96   :  { %1176 = vmatpush1.bf16.msra.mxu0 %v2035_v63  ;;  %v2092_v63 = vld [vmem:[#allocation6 + $0x380] ss:$8 sps:$4 sm:$0xff]   ;;  %v434_v34 = vrot.slane %v425_v30, %v433_v29  ;;  %v1804_v29 = vld [vmem:[%s2433_s6] ss:$0 sm:$0xff] }
  0x97   :  { %1219 = vmatpush1.bf16.msra.mxu1 %v2038_v0  ;;  %1177 = vmatprep.subr.bf16.mxu0 %v2043_v1  ;;  %v293_v0 = vpack.c.bf16 %v269_v59, %v197_v58  ;;  %v295_v1 = vpack.c.bf16 %v271_v61, %v199_v60 }
  0x98   :  { %1220 = vmatprep.subr.bf16.mxu1 %v2046_v2  ;;  %v2107_v2 = vld [vmem:[#allocation8 + $0x78] sm:$0xff]   ;;  %1592 = vperm.xlu0 %1889, %v1589_v25  }
  0x9a   :  { %1178 = vmatpush1.bf16.msra.mxu0 %v2041_v3  ;;  %v2108_v3 = vld [vmem:[#allocation8 + $0x38] sm:$0xff]  }
  0x9b   :  { %1221 = vmatpush1.bf16.msra.mxu1 %v2044_v4  ;;  %1179 = vmatprep.subr.bf16.mxu0 %v2049_v5  ;;  %v2109_v4 = vld [vmem:[#allocation8 + $0x70] sm:$0xff]  }
  0x9c   :  { %1222 = vmatprep.subr.bf16.mxu1 %v2052_v6  ;;  %v2110_v5 = vld [vmem:[#allocation8 + $0x30] sm:$0xff]   ;;  %v2111_v6 = vld [vmem:[#allocation8 + $0x68] sm:$0xff]  }
  0x9e   :  { %1180 = vmatpush2.bf16.msra.mxu0 %v2047_v9  ;;  %v2114_v9 = vld [vmem:[#allocation8 + $0x20] sm:$0xff]  }
  0x9f   :  { %1223 = vmatpush2.bf16.msra.mxu1 %v2050_v10  ;;  %1181 = vmatprep.subr.bf16.mxu0 %v2055_v14  ;;  %v2115_v10 = vld [vmem:[#allocation8 + $0x58] sm:$0xff]   ;;  %v2119_v14 = vld [vmem:[#allocation8 + $0x48] sm:$0xff]  }
  0xa0   :  { %1224 = vmatprep.subr.bf16.mxu1 %v2058_v20  ;;  %v2251_v20 = vmov 1  }
  0xa1   :  { %1890 = vset.pattern.permute.xlu1 %v2251_v20 }
  0xa2   :  { %1182 = vmatpush2.bf16.msra.mxu0 %v2053_v27  ;;  %1445 = vperm.xlu1 %1890, %v1287_v18  }
  0xa3   :  { %1225 = vmatpush2.bf16.msra.mxu1 %v2056_v28  ;;  %1183 = vmatprep.subr.bf16.mxu0 %v2061_v31  ;;  %v429_v31 = vsub.s32 0, %v2330_v49 }
  0xa4   :  { %1226 = vmatprep.subr.bf16.mxu1 %v2064_v32 }
  0xa5   :  { %v430_v35 = vrot.slane %v425_v30, %v429_v31 }
  0xa6   :  { %1184 = vmatpush2.bf16.msra.mxu0 %v2059_v36  ;;  %1449 = vperm.xlu1 %1890, %v1288_v22  }
  0xa7   :  { %1227 = vmatpush2.bf16.msra.mxu1 %v2062_v37  ;;  %1185 = vmatprep.subr.bf16.mxu0 %v2067_v39 }
  0xa8   :  { %1228 = vmatprep.subr.bf16.mxu1 %v2070_v56 }
  0xaa   :  { %1186 = vmatpush2.bf16.msra.mxu0 %v2065_v40 }
  0xab   :  { %1229 = vmatpush2.bf16.msra.mxu1 %v2068_v41  ;;  %1187 = vmatprep.subr.bf16.mxu0 %v2073_v42 }
  0xac   :  { %1230 = vmatprep.subr.bf16.mxu1 %v2076_v43 }
  0xae   :  { %1188 = vmatpush2.bf16.msra.mxu0 %v2071_v44 }
  0xaf   :  { %1231 = vmatpush2.bf16.msra.mxu1 %v2074_v45  ;;  %1189 = vmatprep.subr.bf16.mxu0 %v2079_v46 }
  0xb0   :  { %1232 = vmatprep.subr.bf16.mxu1 %v2082_v47 }
  0xb2   :  { %1190 = vmatpush2.bf16.msra.mxu0 %v2077_v48 }
  0xb3   :  { %1233 = vmatpush2.bf16.msra.mxu1 %v2080_v50  ;;  %1191 = vmatprep.subr.bf16.mxu0 %v2085_v51 }
  0xb4   :  { %1234 = vmatprep.subr.bf16.mxu1 %v2088_v52 }
  0xb6   :  { %1192 = vmatpush2.bf16.msra.mxu0 %v2083_v53 }
  0xb7   :  { %1235 = vmatpush2.bf16.msra.mxu1 %v2086_v54  ;;  %1193 = vmatprep.subr.bf16.mxu0 %v2091_v55 }
  0xb8   :  { %1236 = vmatprep.subr.bf16.mxu1 %v2094_v57 }
  0xba   :  { %1194 = vmatpush2.bf16.msra.mxu0 %v2089_v62 }
  0xbb   :  { %1237 = vmatpush2.bf16.msra.mxu1 %v2092_v63  ;;  %1814 = vmatprep.subr.bf16.mxu0 %v2107_v2 }
  0xbc   :  { %1847 = vmatprep.subr.bf16.mxu1 %v2252_v23 }
  0xbd   :  { %1196 = vmatmul.mubr.bf16.vlgmr.msra.gmra.mxu0 %v293_v0 }
  0xbe   :  { %1239 = vmatmul.mubr.bf16.vlgmr.msra.gmra.mxu1 %v295_v1  ;;  %1815 = vmatpush3.bf16.msra.mxu0 %v2108_v3 }
  0xbf   :  { %1816 = vmatprep.subr.bf16.mxu0 %v2109_v4  ;;  %1848 = vmatpush3.bf16.msra.mxu1 %v2123_v21 }
  0xc0   :  { %1849 = vmatprep.subr.bf16.mxu1 %v2252_v23  ;;  %1863 = vmatprep.mubr.msk.bf16.mxu1 %vm2253_vm0, %v2252_v23 }
  0xc2   :  { %1817 = vmatpush3.bf16.msra.mxu0 %v2110_v5 }
  0xc3   :  { %1818 = vmatprep.subr.bf16.mxu0 %v2111_v6  ;;  %1850 = vmatpush3.bf16.msra.mxu1 %v2124_v24 }
  0xc4   :  { %1851 = vmatprep.subr.bf16.mxu1 %v2252_v23 }
  0xc6   :  { %1819 = vmatpush3.bf16.msra.mxu0 %v2112_v7  ;;  %v2126_v7 = vld [vmem:[#allocation9 + $0x20] sm:$0xff]  }
  0xc7   :  { %1820 = vmatprep.subr.bf16.mxu0 %v2113_v8  ;;  %1852 = vmatpush3.bf16.msra.mxu1 %v2125_v26  ;;  %v2127_v8 = vld [vmem:[#allocation9 + $0x18] sm:$0xff]  }
  0xc8   :  { %1853 = vmatprep.subr.bf16.mxu1 %v2252_v23 }
  0xca   :  { %1821 = vmatpush3.bf16.msra.mxu0 %v2114_v9  ;;  %v2128_v9 = vld [vmem:[#allocation9 + $0x10] sm:$0xff]  }
  0xcb   :  { %1822 = vmatprep.subr.bf16.mxu0 %v2115_v10  ;;  %1854 = vmatpush3.bf16.msra.mxu1 %v2126_v7  ;;  %v2129_v10 = vld [vmem:[#allocation9 + $0x8] sm:$0xff]  }
  0xcc   :  { %1855 = vmatprep.subr.bf16.mxu1 %v2252_v23 }
  0xce   :  { %1823 = vmatpush3.bf16.msra.mxu0 %v2116_v11  ;;  %v2130_v11 = vld [vmem:[#allocation9] sm:$0xff]  }
  0xcf   :  { %1824 = vmatprep.subr.bf16.mxu0 %v2117_v12  ;;  %1856 = vmatpush3.bf16.msra.mxu1 %v2127_v8  ;;  %v1786_v12 = vld [vmem:[%s2432_s5] ss:$0 sm:$0xff] }
  0xd0   :  { %1857 = vmatprep.subr.bf16.mxu1 %v2252_v23 }
  0xd2   :  { %1825 = vmatpush3.bf16.msra.mxu0 %v2118_v13 }
  0xd3   :  { %1826 = vmatprep.subr.bf16.mxu0 %v2119_v14  ;;  %1858 = vmatpush3.bf16.msra.mxu1 %v2128_v9  ;;  %v1803_v14 = vld [vmem:[%s2432_s5 + $0x1] ss:$0 sm:$0xff] }
  0xd4   :  { %1859 = vmatprep.subr.bf16.mxu1 %v2252_v23 }
  0xd6   :  { %1827 = vmatpush3.bf16.msra.mxu0 %v2120_v15 }
  0xd7   :  { %1828 = vmatprep.subr.bf16.mxu0 %v2121_v16  ;;  %1860 = vmatpush3.bf16.msra.mxu1 %v2129_v10 }
  0xd8   :  { %1861 = vmatprep.subr.bf16.mxu1 %v2252_v23 }
  0xda   :  { %1829 = vmatpush3.bf16.msra.mxu0 %v2122_v17 }
  0xdb   :  { %1867 = vmatprep.subr.bf16.mxu0 %v2252_v23  ;;  %1862 = vmatpush3.bf16.msra.mxu1 %v2130_v11 }
  0xf5   :  { %v1293_v13 = vpop.permute.xlu0 %1292 }
  0xf6   :  { %v1304_v17 = vmul.f32 %v1786_v12, %v1293_v13 }
 0x10f   :  { %v1298_v22 = vpop.permute.xlu0 %1297 }
 0x110   :  { %v1305_v26 = vmul.f32 %v1786_v12, %v1298_v22 }
 0x11d   :  { %v1446_v15 = vpop.permute.xlu1 %1445 }
 0x11e   :  { %v1456_v19 = vmul.f32 %v1803_v14, %v1446_v15 }
 0x121   :  { %v1450_v25 = vpop.permute.xlu1 %1449 }
 0x122   :  { %v1457_v30 = vmul.f32 %v1803_v14, %v1450_v25 }
 0x13d   :  { %v1111_v27 = vpop.f32.mrf.mxu0 }
 0x13e   :  { %v1154_v28 = vpop.f32.mrf.mxu1  ;;  %v1112_v39 = vadd.f32 %v1111_v27, %v430_v35 }
 0x13f   :  { %v1113_v32 = vpop.f32.mrf.mxu0 }
 0x140   :  { %v1156_v33 = vpop.f32.mrf.mxu1  ;;  %v1114_v38 = vadd.f32 %v1113_v32, %v434_v34  ;;  %v1155_v46 = vadd.f32 %v1154_v28, %v1112_v39  ;;  %v1805_v39 = vld [vmem:[%s2435_s8] ss:$0 sm:$0xff]  ;;  %s2211_s8 = scalar_lea.vmem %s1648_s15, 16 }
 0x141   :  { %v1115_v36 = vpop.f32.mrf.mxu0  ;;  %p2212_p6 = scmp.ne.s32.totalorder %s1648_s15, %s2211_s8  ;;  %p2217_p8 = scmp.lt.s32.totalorder %s2215_s2, %s2211_s8 }
 0x142   :  { %v1158_v37 = vpop.f32.mrf.mxu1  ;;  %v1116_v41 = vadd.f32 %v1115_v36, %v430_v35  ;;  %v1157_v44 = vadd.f32 %v1156_v33, %v1114_v38 }
 0x143   :  { %v1117_v56 = vpop.f32.mrf.mxu0  ;;  %p2218_p9 = por %p2217_p8, %p2216_p7 }
 0x144   :  { %v1160_v40 = vpop.f32.mrf.mxu1  ;;  %v1118_v45 = vadd.f32 %v1117_v56, %v434_v34  ;;  %v1159_v50 = vadd.f32 %v1158_v37, %v1116_v41 }
 0x145   :  { %p2219_p10 = pnand %p2218_p9, %p2212_p6 }
 0x146   :  { %v1161_v55 = vadd.f32 %v1160_v40, %v1118_v45 }
 0x17d   :  { %v1197_v42 = vpop.f32.mrf.mxu0 }
 0x17e   :  { %v1240_v43 = vpop.f32.mrf.mxu1  ;;  %v1198_v52 = vadd.f32 %v1197_v42, %v1155_v46 }
 0x17f   :  { %v1199_v47 = vpop.f32.mrf.mxu0 }
 0x180   :  { %v1242_v48 = vpop.f32.mrf.mxu1  ;;  %v1200_v51 = vadd.f32 %v1199_v47, %v1157_v44  ;;  %v1241_v62 = vadd.f32 %v1240_v43, %v1198_v52 }
 0x181   :  { %v1201_v53 = vpop.f32.mrf.mxu0 }
 0x182   :  { %v1244_v54 = vpop.f32.mrf.mxu1  ;;  %v1202_v57 = vadd.f32 %v1201_v53, %v1159_v50  ;;  %v1243_v59 = vadd.f32 %v1242_v48, %v1200_v51  ;;  %v1249_v4 = vmax.f32 %v1241_v62, 0.0  ;;  %v1586_v48 = vld [vmem:[%s2436_s9] sm:$0x1]  ;;  %v1593_v51 = vpop.permute.xlu0 %1592 }
 0x183   :  { %v1203_v58 = vpop.f32.mrf.mxu0  ;;  %v1587_v50 = vpack.c.bf16 %v1586_v48, %v1586_v48  ;;  %v1598_v52 = vrot.slane %v1593_v51, %v429_v31 }
 0x184   :  { %v1245_v60 = vadd.f32 %v1244_v54, %v1202_v57  ;;  %v1204_v61 = vadd.f32 %v1203_v58, %v1161_v55  ;;  %v1246_v63 = vpop.f32.mrf.mxu1  ;;  %v1250_v2 = vmax.f32 %v1243_v59, 0.0 }
 0x186   :  { %v1247_v0 = vadd.f32 %v1246_v63, %v1204_v61  ;;  %v1251_v1 = vmax.f32 %v1245_v60, 0.0 }
 0x188   :  { %v1252_v3 = vmax.f32 %v1247_v0, 0.0  ;;  %v1253_v6 = vpack.c.bf16 %v1251_v1, %v1249_v4 }
 0x18a   :  { %v1254_v5 = vpack.c.bf16 %v1252_v3, %v1250_v2 }
 0x18c   :  { %1434 = vmatprep.mubr.bf16.mxu0 %v1254_v5 }
 0x18d   :  { %1435 = vmatmul.mubr.bf16.vlgmr.msra.gmra.mxu0 %v1253_v6 }
 0x18e   :  { %1869 = vmatprep.mubr.msk.bf16.mxu0 %vm2253_vm0, %v2252_v23 }
 0x24d   :  { %v1830_v16 = vpop.f32.mrf.mxu0 }
 0x24f   :  { %v1831_v18 = vpop.f32.mrf.mxu0 }
 0x250   :  { %v1832_v20 = vadd.f32 %v1831_v18, %v1830_v16 }
 0x251   :  { %v1833_v21 = vpop.f32.mrf.mxu0 }
 0x252   :  { %v1437_v24 = vadd.f32 %v1832_v20, %v1304_v17 }
 0x253   :  { %v1834_v23 = vpop.f32.mrf.mxu0 }
 0x254   :  { %v1458_v27 = vadd.f32 %v1456_v19, %v1437_v24  ;;  %v1835_v28 = vadd.f32 %v1834_v23, %v1833_v21 }
 0x256   :  { %v1440_v32 = vadd.f32 %v1835_v28, %v1305_v26  ;;  %v1467_v33 = vadd.f32 %v1804_v29, %v1458_v27 }
 0x258   :  { %v1459_v34 = vadd.f32 %v1457_v30, %v1440_v32  ;;  %v1469_v36 = vmax.f32 %v1467_v33, 0.0 }
 0x25a   :  { %v1468_v35 = vadd.f32 %v1804_v29, %v1459_v34 }
 0x25c   :  { %v1470_v37 = vmax.f32 %v1468_v35, 0.0 }
 0x25e   :  { %v1471_v38 = vpack.c.bf16 %v1470_v37, %v1469_v36 }
 0x260   :  { %1864 = vmatmul.mubr.bf16.vlgmr.msra.gmra.mxu1 %v1471_v38 }
 0x320   :  { %v1577_v56 = vpop.f32.mrf.mxu1 }
 0x321   :  { %v1578_v41 = vadd.f32 %v1805_v39, %v1577_v56 }
 0x322   :  { %v1865_v40 = vpop.f32.mrf.mxu1 }
 0x323   :  { %v1584_v45 = vmax.f32 %v1578_v41, 0.0 }
 0x324   :  { %v1580_v42 = vpop.f32.mrf.mxu1 }
 0x325   :  { %v1581_v43 = vadd.f32 %v1805_v39, %v1580_v42 }
 0x326   :  { %v1866_v44 = vpop.f32.mrf.mxu1 }
 0x327   :  { %v1585_v46 = vmax.f32 %v1581_v43, 0.0 }
 0x329   :  { %v1588_v47 = vpack.c.bf16 %v1585_v46, %v1584_v45 }
 0x32b   :  { %1868 = vmatpush3.bf16.xpose.msra.mxu0 %v1588_v47 }
 0x332   :  { %1870 = vmatmul.mubr.bf16.vlgmr.msra.gmra.mxu0 %v1587_v50 }
 0x3f2   :  { %v1633_v53 = vpop.f32.mrf.mxu0 }
 0x3f3   :  { %v1634_v54 = vadd.f32 %v1633_v53, %v1598_v52 }
 0x3f4   :  { %v1871_v55 = vpop.f32.mrf.mxu0 }
 0x3f5   :  { %1640 = vst.msk [vmem:[#allocation11] sm:$0x1] %vm1639_vm1, %v1634_v54 }
 0x3f6   :  { %v1636_v57 = vpop.f32.mrf.mxu0 }
 0x3f7   :  { %2222 = shalt.err (!%p2219_p10)
}
 0x3f8   :  { %1650 = dma.vmem_to_hbm [thread:$0]  %s1648_s15, 16, %s2438_s11, [#allocation5]   ;;  %v1872_v49 = vpop.f32.mrf.mxu0 }
 0x3f9   :  { %2237 = dma.done.wait [#allocation5], 16  }
 0x3fa   :  { %2238 = vsyncadd [#allocation5], 4294967280 }
 0x3fb   :  { %1654 = vsyncpa [#allocation4], 1 }
 0x3fc   :  { %1655 = vsyncpa [#allocation7], 1 }
 0x3fd   :  { %1656 = vsyncpa [#allocation10], 1 }
 0x3fe   :  { %1657 = vsyncpa [#allocation5], 1 }

// kernel: tpu_custom_call.1
= control target key start
LH: loop header
LB: loop body
LE: loop exit
PB: predicated region body
PF: predicated region fallthrough
CT: control target
= control target key end

     0   :  { %s2427_s0 = inlined_call_operand.hbm [shape: f32[2,1024], index: 0, kind: input, shape index: {}]   ;;  %s2428_s1 = inlined_call_operand.vmem [shape: f32[2,2], index: 1, kind: input, shape index: {}]   ;;  %s2429_s2 = inlined_call_operand.hbm [shape: bf16[1024,256], index: 2, kind: input, shape index: {}]   ;;  %s2430_s3 = inlined_call_operand.vmem [shape: f32[1,256], index: 3, kind: input, shape index: {}]   ;;  %s2431_s4 = inlined_call_operand.hbm [shape: bf16[256,128], index: 4, kind: input, shape index: {}]   ;;  %s2432_s5 = inlined_call_operand.vmem [shape: f32[2,128], index: 5, kind: input, shape index: {}]   ;;  %s2433_s6 = inlined_call_operand.vmem [shape: f32[1,128], index: 6, kind: input, shape index: {}]   ;;  %s2434_s7 = inlined_call_operand.hbm [shape: bf16[128,128], index: 7, kind: input, shape index: {}]   ;;  %s2435_s8 = inlined_call_operand.vmem [shape: f32[1,128], index: 8, kind: input, shape index: {}]   ;;  %s2436_s9 = inlined_call_operand.vmem [shape: f32[1,128], index: 9, kind: input, shape index: {}]   ;;  %s2437_s10 = inlined_call_operand.<no memory space> [shape: f32[1,1], index: 10, kind: input, shape index: {}]   ;;  %s2438_s11 = inlined_call_operand.hbm [shape: f32[1,1,16], index: 11, kind: output, shape index: {}]  }
   0x1   :  { %v16_v0 = vstv %s2437_s10 }
   0x2   :  { %17 = vst [vmem:[#allocation2] sm:$0x1] %v16_v0 }
   0x3   :  { %18 = vsyncpa [#allocation4], 0 }
   0x4   :  { %19 = vsyncpa [#allocation7], 0 }
   0x5   :  { %20 = vsyncpa [#allocation10], 0 }
   0x6   :  { %21 = vsyncpa [#allocation5], 0 }
   0x7   :  { %26 = vsyncadd [#allocation4], 1792  ;;  %s2239_s19 = smov [#allocation6]  }
   0x8   :  { %s41_s20 = sshll.u32 %s2239_s19, 4  ;;  %s42_s20 = int_to_ptr.vmem [resolvable:$true] %s41_s20 }
   0x9   :  { %s2139_s21 = scalar_lea.vmem %s42_s20, 16384  ;;  %p2144_p1 = scmp.lt.s32.totalorder %s42_s20, %s42_s20 }
   0xa   :  { %p2140_p0 = scmp.ne.s32.totalorder %s42_s20, %s2139_s21  ;;  %p2145_p2 = scmp.lt.s32.totalorder %s2139_s21, %s2139_s21 }
   0xc   :  { %p2146_p3 = por %p2145_p2, %p2144_p1 }
   0xe   :  { %p2147_p4 = pnand %p2146_p3, %p2140_p0 }
  0x10   :  { %2150 = shalt.err (!%p2147_p4)
}
  0x11   :  { %s2240_s22 = smov 128   ;;  %s2241_s23 = smov 8  }
  0x12   :  { %47 = dma.hbm_to_vmem [thread:$0]  %s2429_s2, 16384, %s42_s20, [#allocation7], %s2240_s22, %s2240_s22, %s2241_s23  }
  0x13   :  { %s2242_s25 = smov [#allocation3]  }
  0x14   :  { %s27_s26 = sshll.u32 %s2242_s25, 4  ;;  %s28_s26 = int_to_ptr.vmem [resolvable:$true] %s27_s26 }
  0x15   :  { %s2159_s27 = scalar_lea.vmem %s28_s26, 256  ;;  %s2163_s28 = scalar_lea.vmem %s28_s26, 2048 }
  0x16   :  { %p2160_p5 = scmp.ne.s32.totalorder %s28_s26, %s2159_s27  ;;  %p2164_p6 = scmp.lt.s32.totalorder %s28_s26, %s28_s26 }
  0x17   :  { %p2165_p7 = scmp.lt.s32.totalorder %s2163_s28, %s2159_s27 }
  0x19   :  { %p2166_p8 = por %p2165_p7, %p2164_p6 }
  0x1b   :  { %p2167_p9 = pnand %p2166_p8, %p2160_p5 }
  0x1d   :  { %2170 = shalt.err (!%p2167_p9)
}
  0x1e   :  { %s2243_s29 = smov 256   ;;  %s2244_s30 = smov 16  }
  0x1f   :  { %33 = dma.hbm_to_vmem [thread:$0]  %s2427_s0, 256, %s28_s26, [#allocation4], %s2243_s29, %s2243_s29, %s2244_s30  }
  0x20   :  { %s2245_s14 = smov [#allocation8]  }
  0x21   :  { %s55_s15 = sshll.u32 %s2245_s14, 4  ;;  %s56_s15 = int_to_ptr.vmem [resolvable:$true] %s55_s15 }
  0x22   :  { %s2179_s2 = scalar_lea.vmem %s56_s15, 2048  ;;  %p2184_p11 = scmp.lt.s32.totalorder %s56_s15, %s56_s15 }
  0x23   :  { %p2180_p10 = scmp.ne.s32.totalorder %s56_s15, %s2179_s2  ;;  %p2185_p12 = scmp.lt.s32.totalorder %s2179_s2, %s2179_s2 }
  0x25   :  { %p2186_p13 = por %p2185_p12, %p2184_p11 }
  0x27   :  { %p2187_p0 = pnand %p2186_p13, %p2180_p10 }
  0x29   :  { %2190 = shalt.err (!%p2187_p0)
}
  0x2a   :  { %s2246_s16 = smov 64   ;;  %s2247_s17 = smov 4  }
  0x2b   :  { %61 = dma.hbm_to_vmem [thread:$0]  %s2431_s4, 2048, %s56_s15, [#allocation7], %s2246_s16, %s2246_s16, %s2247_s17  }
  0x2c   :  { %s2248_s20 = smov [#allocation9]  }
  0x2d   :  { %s71_s21 = sshll.u32 %s2248_s20, 4  ;;  %s72_s21 = int_to_ptr.vmem [resolvable:$true] %s71_s21 }
  0x2e   :  { %s2199_s0 = scalar_lea.vmem %s72_s21, 1024  ;;  %p2204_p2 = scmp.lt.s32.totalorder %s72_s21, %s72_s21 }
  0x2f   :  { %p2200_p1 = scmp.ne.s32.totalorder %s72_s21, %s2199_s0  ;;  %p2205_p3 = scmp.lt.s32.totalorder %s2199_s0, %s2199_s0 }
  0x31   :  { %p2206_p4 = por %p2205_p3, %p2204_p2 }
  0x33   :  { %p2207_p5 = pnand %p2206_p4, %p2200_p1 }
  0x35   :  { %2210 = shalt.err (!%p2207_p5)
}
  0x36   :  { %77 = dma.hbm_to_vmem [thread:$0]  %s2434_s7, 1024, %s72_s21, [#allocation10], %s2246_s16, %s2246_s16, %s2247_s17  }
  0x37   :  { %2231 = dma.done.wait [#allocation4], 2048  }
  0x38   :  { %2232 = vsyncadd [#allocation4], 4294965248 }
  0x39   :  { %2233 = dma.done.wait [#allocation7], 18432  }
  0x3a   :  { %2234 = vsyncadd [#allocation7], 4294948864 }
  0x3b   :  { %2235 = dma.done.wait [#allocation10], 1024  }
  0x3c   :  { %2236 = vsyncadd [#allocation10], 4294966272  ;;  %v1891_v1 = vld [vmem:[#allocation6 + $0x74] ss:$8 sps:$4 sm:$0xff]   ;;  %v1895_v3 = vld [vmem:[#allocation6 + $0x70] ss:$8 sps:$4 sm:$0xff]   ;;  %v136_v42 = vlaneseq }
  0x3d   :  { %v1893_v2 = vld [vmem:[#allocation6 + $0x174] ss:$8 sps:$4 sm:$0xff]   ;;  %1077 = vmatprep.subr.bf16.mxu0 %v1891_v1  ;;  %v1896_v4 = vld [vmem:[#allocation6 + $0x170] ss:$8 sps:$4 sm:$0xff]   ;;  %v1897_v5 = vld [vmem:[#allocation6 + $0x64] ss:$8 sps:$4 sm:$0xff]  }
  0x3e   :  { %1120 = vmatprep.subr.bf16.mxu1 %v1893_v2  ;;  %1078 = vmatpush1.bf16.msra.mxu0 %v1895_v3  ;;  %v1899_v6 = vld [vmem:[#allocation6 + $0x164] ss:$8 sps:$4 sm:$0xff]   ;;  %v1901_v7 = vld [vmem:[#allocation6 + $0x60] ss:$8 sps:$4 sm:$0xff]   ;;  %v1903_v9 = vld [vmem:[#allocation6 + $0x54] ss:$8 sps:$4 sm:$0xff]  }
  0x3f   :  { %1121 = vmatpush1.bf16.msra.mxu1 %v1896_v4  ;;  %1079 = vmatprep.subr.bf16.mxu0 %v1897_v5  ;;  %v1902_v8 = vld [vmem:[#allocation6 + $0x160] ss:$8 sps:$4 sm:$0xff]   ;;  %v1905_v10 = vld [vmem:[#allocation6 + $0x154] ss:$8 sps:$4 sm:$0xff]   ;;  %v1907_v11 = vld [vmem:[#allocation6 + $0x50] ss:$8 sps:$4 sm:$0xff]  }
  0x40   :  { %1122 = vmatprep.subr.bf16.mxu1 %v1899_v6  ;;  %v1908_v12 = vld [vmem:[#allocation6 + $0x150] ss:$8 sps:$4 sm:$0xff]   ;;  %v1909_v13 = vld [vmem:[#allocation6 + $0x44] ss:$8 sps:$4 sm:$0xff]   ;;  %v1913_v15 = vld [vmem:[#allocation6 + $0x40] ss:$8 sps:$4 sm:$0xff]  }
  0x41   :  { %v1911_v14 = vld [vmem:[#allocation6 + $0x144] ss:$8 sps:$4 sm:$0xff]   ;;  %v1914_v16 = vld [vmem:[#allocation6 + $0x140] ss:$8 sps:$4 sm:$0xff]   ;;  %v1915_v17 = vld [vmem:[#allocation6 + $0x34] ss:$8 sps:$4 sm:$0xff]  }
  0x42   :  { %1080 = vmatpush1.bf16.msra.mxu0 %v1901_v7  ;;  %v1917_v18 = vld [vmem:[#allocation6 + $0x134] ss:$8 sps:$4 sm:$0xff]   ;;  %v1919_v19 = vld [vmem:[#allocation6 + $0x30] ss:$8 sps:$4 sm:$0xff]   ;;  %v1921_v21 = vld [vmem:[#allocation6 + $0x24] ss:$8 sps:$4 sm:$0xff]  }
  0x43   :  { %1123 = vmatpush1.bf16.msra.mxu1 %v1902_v8  ;;  %1081 = vmatprep.subr.bf16.mxu0 %v1903_v9  ;;  %v1920_v20 = vld [vmem:[#allocation6 + $0x130] ss:$8 sps:$4 sm:$0xff]   ;;  %v1923_v22 = vld [vmem:[#allocation6 + $0x124] ss:$8 sps:$4 sm:$0xff]   ;;  %v1925_v23 = vld [vmem:[#allocation6 + $0x20] ss:$8 sps:$4 sm:$0xff]  }
  0x44   :  { %1124 = vmatprep.subr.bf16.mxu1 %v1905_v10  ;;  %v1926_v24 = vld [vmem:[#allocation6 + $0x120] ss:$8 sps:$4 sm:$0xff]   ;;  %v1927_v25 = vld [vmem:[#allocation6 + $0x14] ss:$8 sps:$4 sm:$0xff]   ;;  %v1931_v27 = vld [vmem:[#allocation6 + $0x10] ss:$8 sps:$4 sm:$0xff]  }
  0x45   :  { %v1929_v26 = vld [vmem:[#allocation6 + $0x114] ss:$8 sps:$4 sm:$0xff]   ;;  %v1932_v28 = vld [vmem:[#allocation6 + $0x110] ss:$8 sps:$4 sm:$0xff]   ;;  %v1933_v29 = vld [vmem:[#allocation6 + $0x4] ss:$8 sps:$4 sm:$0xff]  }
  0x46   :  { %1082 = vmatpush1.bf16.msra.mxu0 %v1907_v11  ;;  %v1935_v30 = vld [vmem:[#allocation6 + $0x104] ss:$8 sps:$4 sm:$0xff]   ;;  %v1937_v31 = vld [vmem:[#allocation6] ss:$8 sps:$4 sm:$0xff]   ;;  %v1939_v33 = vld [vmem:[#allocation6 + $0xf4] ss:$8 sps:$4 sm:$0xff]  }
  0x47   :  { %1125 = vmatpush1.bf16.msra.mxu1 %v1908_v12  ;;  %1083 = vmatprep.subr.bf16.mxu0 %v1909_v13  ;;  %v1938_v32 = vld [vmem:[#allocation6 + $0x100] ss:$8 sps:$4 sm:$0xff]   ;;  %v1941_v34 = vld [vmem:[#allocation6 + $0x1f4] ss:$8 sps:$4 sm:$0xff]   ;;  %v1943_v35 = vld [vmem:[#allocation6 + $0xf0] ss:$8 sps:$4 sm:$0xff]  }
  0x48   :  { %1126 = vmatprep.subr.bf16.mxu1 %v1911_v14  ;;  %v1944_v36 = vld [vmem:[#allocation6 + $0x1f0] ss:$8 sps:$4 sm:$0xff]   ;;  %v1945_v37 = vld [vmem:[#allocation6 + $0xe4] ss:$8 sps:$4 sm:$0xff]   ;;  %v1949_v39 = vld [vmem:[#allocation6 + $0xe0] ss:$8 sps:$4 sm:$0xff]  }
  0x49   :  { %v1947_v38 = vld [vmem:[#allocation6 + $0x1e4] ss:$8 sps:$4 sm:$0xff]   ;;  %v2249_v40 = vmov 1983009808   ;;  %v1950_v43 = vld [vmem:[#allocation6 + $0x1e0] ss:$8 sps:$4 sm:$0xff]  }
  0x4a   :  { %1084 = vmatpush1.bf16.msra.mxu0 %v1913_v15  ;;  %v134_v41 = vunpack.c.l.s4 %v2249_v40  ;;  %v1951_v44 = vld [vmem:[#allocation6 + $0xd4] ss:$8 sps:$4 sm:$0xff]   ;;  %v1955_v46 = vld [vmem:[#allocation6 + $0xd0] ss:$8 sps:$4 sm:$0xff]   ;;  %v2330_v49 = vshrl.u32 %v136_v42, 7  ;;  %vm2253_vm0 = vmmov 0  }
  0x4b   :  { %1127 = vmatpush1.bf16.msra.mxu1 %v1914_v16  ;;  %1085 = vmatprep.subr.bf16.mxu0 %v1915_v17  ;;  %v1953_v45 = vld [vmem:[#allocation6 + $0x1d4] ss:$8 sps:$4 sm:$0xff]   ;;  %v1956_v47 = vld [vmem:[#allocation6 + $0x1d0] ss:$8 sps:$4 sm:$0xff]   ;;  %v1957_v50 = vld [vmem:[#allocation6 + $0xc4] ss:$8 sps:$4 sm:$0xff]  }
  0x4c   :  { %1128 = vmatprep.subr.bf16.mxu1 %v1917_v18  ;;  %v135_v48 = vunpack.c.0.s8 %v134_v41  ;;  %v1959_v51 = vld [vmem:[#allocation6 + $0x1c4] ss:$8 sps:$4 sm:$0xff]   ;;  %v1961_v52 = vld [vmem:[#allocation6 + $0xc0] ss:$8 sps:$4 sm:$0xff]   ;;  %v1963_v54 = vld [vmem:[#allocation6 + $0xb4] ss:$8 sps:$4 sm:$0xff]  }
  0x4d   :  { %v1962_v53 = vld [vmem:[#allocation6 + $0x1c0] ss:$8 sps:$4 sm:$0xff]   ;;  %v1965_v55 = vld [vmem:[#allocation6 + $0x1b4] ss:$8 sps:$4 sm:$0xff]   ;;  %v1967_v59 = vld [vmem:[#allocation6 + $0xb0] ss:$8 sps:$4 sm:$0xff]  }
  0x4e   :  { %1086 = vmatpush1.bf16.msra.mxu0 %v1919_v19  ;;  %v2333_v56 = vsub.s32 %v135_v48, %v2330_v49  ;;  %v1987_v57 = vld [vmem:[#allocation3] ss:$16 sps:$4 sm:$0xff]   ;;  %v1995_v63 = vld [vmem:[#allocation3 + $0x4] ss:$16 sps:$4 sm:$0xff]   ;;  %s2254_s14 = smov [#allocation11]   ;;  %vm1639_vm1 = vcmask 122880  }
  0x4f   :  { %1129 = vmatpush1.bf16.msra.mxu1 %v1920_v20  ;;  %1087 = vmatprep.subr.bf16.mxu0 %v1921_v21  ;;  %v1989_v58 = vld [vmem:[#allocation3 + $0x20] ss:$16 sps:$4 sm:$0xff]   ;;  %v1996_v2 = vld [vmem:[#allocation3 + $0x24] ss:$16 sps:$4 sm:$0xff]   ;;  %s1647_s15 = sshll.u32 %s2254_s14, 4  ;;  %s1648_s15 = int_to_ptr.vmem [resolvable:$true] %s1647_s15 }
  0x50   :  { %1130 = vmatprep.subr.bf16.mxu1 %v1923_v22  ;;  %v1968_v60 = vld [vmem:[#allocation6 + $0x1b0] ss:$8 sps:$4 sm:$0xff]   ;;  %v139_v0 = vrot.slane %v1987_v57, %v2333_v56  ;;  %v153_v1 = vrot.slane %v1989_v58, %v2333_v56  ;;  %v1997_v3 = vld [vmem:[#allocation3 + $0x44] ss:$16 sps:$4 sm:$0xff]   ;;  %v146_v8 = vrot.slane %v1995_v63, %v2333_v56  ;;  %v160_v11 = vrot.slane %v1996_v2, %v2333_v56  ;;  %v1973_v15 = vld [vmem:[#allocation6 + $0xa0] ss:$8 sps:$4 sm:$0xff]   ;;  %p2216_p7 = scmp.lt.s32.totalorder %s1648_s15, %s1648_s15 }
  0x51   :  { %v1991_v61 = vld [vmem:[#allocation3 + $0x40] ss:$16 sps:$4 sm:$0xff]   ;;  %v1998_v4 = vld [vmem:[#allocation3 + $0x64] ss:$16 sps:$4 sm:$0xff]   ;;  %v218_v12 = vrot.slane %v1997_v3, %v2333_v56  ;;  %s2215_s2 = scalar_lea.vmem %s1648_s15, 32 }
  0x52   :  { %1088 = vmatpush1.bf16.msra.mxu0 %v1925_v23  ;;  %v1993_v62 = vld [vmem:[#allocation3 + $0x60] ss:$16 sps:$4 sm:$0xff]   ;;  %v1969_v5 = vld [vmem:[#allocation6 + $0xa4] ss:$8 sps:$4 sm:$0xff]   ;;  %v211_v6 = vrot.slane %v1991_v61, %v2333_v56  ;;  %v162_v10 = vcombine.high %v139_v0, %v153_v1  ;;  %v232_v14 = vrot.slane %v1998_v4, %v2333_v56  ;;  %v164_v17 = vcombine.high %v146_v8, %v160_v11  ;;  %v1975_v18 = vld [vmem:[#allocation6 + $0x94] ss:$8 sps:$4 sm:$0xff]  }
  0x53   :  { %1131 = vmatpush1.bf16.msra.mxu1 %v1926_v24  ;;  %1089 = vmatprep.subr.bf16.mxu0 %v1927_v25  ;;  %v225_v7 = vrot.slane %v1993_v62, %v2333_v56  ;;  %v1971_v9 = vld [vmem:[#allocation6 + $0x1a4] ss:$8 sps:$4 sm:$0xff]   ;;  %v1974_v16 = vld [vmem:[#allocation6 + $0x1a0] ss:$8 sps:$4 sm:$0xff]   ;;  %v1977_v21 = vld [vmem:[#allocation6 + $0x194] ss:$8 sps:$4 sm:$0xff]  }
  0x54   :  { %1132 = vmatprep.subr.bf16.mxu1 %v1929_v26  ;;  %v236_v20 = vcombine.high %v218_v12, %v232_v14  ;;  %v1979_v23 = vld [vmem:[#allocation6 + $0x90] ss:$8 sps:$4 sm:$0xff]   ;;  %v1981_v25 = vld [vmem:[#allocation6 + $0x84] ss:$8 sps:$4 sm:$0xff]   ;;  %v2005_v41 = vld [vmem:[#allocation6 + $0x260] ss:$8 sps:$4 sm:$0xff]  }
  0x55   :  { %v234_v13 = vcombine.high %v211_v6, %v225_v7  ;;  %v1980_v24 = vld [vmem:[#allocation6 + $0x190] ss:$8 sps:$4 sm:$0xff]   ;;  %v1983_v26 = vld [vmem:[#allocation6 + $0x184] ss:$8 sps:$4 sm:$0xff]   ;;  %v2008_v42 = vld [vmem:[#allocation6 + $0x360] ss:$8 sps:$4 sm:$0xff]  }
  0x56   :  { %1090 = vmatpush1.bf16.msra.mxu0 %v1931_v27  ;;  %v292_v22 = vpack.c.bf16 %v236_v20, %v164_v17  ;;  %v1985_v27 = vld [vmem:[#allocation6 + $0x80] ss:$8 sps:$4 sm:$0xff]   ;;  %v2010_v40 = vld [vmem:[#allocation6 + $0x364] ss:$8 sps:$4 sm:$0xff]   ;;  %v2037_v61 = vld [vmem:[#allocation6 + $0x214] ss:$8 sps:$4 sm:$0xff]  }
  0x57   :  { %1133 = vmatpush1.bf16.msra.mxu1 %v1932_v28  ;;  %1091 = vmatprep.subr.bf16.mxu0 %v1933_v29  ;;  %v290_v19 = vpack.c.bf16 %v234_v13, %v162_v10  ;;  %v1986_v28 = vld [vmem:[#allocation6 + $0x180] ss:$8 sps:$4 sm:$0xff]   ;;  %v161_v29 = vcombine.low %v139_v0, %v153_v1  ;;  %v2022_v48 = vld [vmem:[#allocation6 + $0x344] ss:$8 sps:$4 sm:$0xff]   ;;  %v2040_v62 = vld [vmem:[#allocation6 + $0x314] ss:$8 sps:$4 sm:$0xff]  }
  0x58   :  { %1134 = vmatprep.subr.bf16.mxu1 %v1935_v30  ;;  %1152 = vmatprep.mubr.bf16.mxu1 %v292_v22  ;;  %v233_v30 = vcombine.low %v211_v6, %v225_v7  ;;  %v2031_v57 = vld [vmem:[#allocation6 + $0x224] ss:$8 sps:$4 sm:$0xff]   ;;  %v2035_v63 = vld [vmem:[#allocation6 + $0x210] ss:$8 sps:$4 sm:$0xff]   ;;  %v2041_v3 = vld [vmem:[#allocation6 + $0x200] ss:$8 sps:$4 sm:$0xff]  }
  0x59   :  { %1109 = vmatprep.mubr.bf16.mxu0 %v290_v19  ;;  %v2034_v58 = vld [vmem:[#allocation6 + $0x324] ss:$8 sps:$4 sm:$0xff]   ;;  %v2038_v0 = vld [vmem:[#allocation6 + $0x310] ss:$8 sps:$4 sm:$0xff]   ;;  %v2044_v4 = vld [vmem:[#allocation6 + $0x300] ss:$8 sps:$4 sm:$0xff]  }
  0x5a   :  { %1092 = vmatpush1.bf16.msra.mxu0 %v1937_v31  ;;  %v163_v31 = vcombine.low %v146_v8, %v160_v11  ;;  %v2043_v1 = vld [vmem:[#allocation6 + $0x204] ss:$8 sps:$4 sm:$0xff]   ;;  %v2052_v6 = vld [vmem:[#allocation6 + $0x3f4] ss:$8 sps:$4 sm:$0xff]   ;;  %v2095_v7 = vld [vmem:[#allocation3 + $0x8] ss:$16 sps:$4 sm:$0xff]  }
  0x5b   :  { %1135 = vmatpush1.bf16.msra.mxu1 %v1938_v32  ;;  %1093 = vmatprep.subr.bf16.mxu0 %v1939_v33  ;;  %v235_v32 = vcombine.low %v218_v12, %v232_v14  ;;  %v2001_v33 = vld [vmem:[#allocation6 + $0x274] ss:$8 sps:$4 sm:$0xff]   ;;  %v2046_v2 = vld [vmem:[#allocation6 + $0x304] ss:$8 sps:$4 sm:$0xff]   ;;  %v2097_v8 = vld [vmem:[#allocation3 + $0x28] ss:$16 sps:$4 sm:$0xff]  }
  0x5c   :  { %1136 = vmatprep.subr.bf16.mxu1 %v1941_v34  ;;  %v2004_v34 = vld [vmem:[#allocation6 + $0x374] ss:$8 sps:$4 sm:$0xff]   ;;  %v2050_v10 = vld [vmem:[#allocation6 + $0x3f0] ss:$8 sps:$4 sm:$0xff]   ;;  %v2055_v14 = vld [vmem:[#allocation6 + $0x2e4] ss:$8 sps:$4 sm:$0xff]  }
  0x5d   :  { %v2099_v11 = vld [vmem:[#allocation3 + $0x48] ss:$16 sps:$4 sm:$0xff]   ;;  %v2103_v13 = vld [vmem:[#allocation3 + $0xc] ss:$16 sps:$4 sm:$0xff]  }
  0x5e   :  { %1094 = vmatpush2.bf16.msra.mxu0 %v1943_v35  ;;  %v289_v35 = vpack.c.bf16 %v233_v30, %v161_v29  ;;  %v2101_v12 = vld [vmem:[#allocation3 + $0x68] ss:$16 sps:$4 sm:$0xff]   ;;  %v2104_v17 = vld [vmem:[#allocation3 + $0x2c] ss:$16 sps:$4 sm:$0xff]  }
  0x5f   :  { %1137 = vmatpush2.bf16.msra.mxu1 %v1944_v36  ;;  %1095 = vmatprep.subr.bf16.mxu0 %v1945_v37  ;;  %v291_v36 = vpack.c.bf16 %v235_v32, %v163_v31  ;;  %v1999_v37 = vld [vmem:[#allocation6 + $0x270] ss:$8 sps:$4 sm:$0xff]   ;;  %v2106_v19 = vld [vmem:[#allocation3 + $0x6c] ss:$16 sps:$4 sm:$0xff]   ;;  %v2353_v22 = vrot.slane %v2101_v12, %v2333_v56 }
  0x60   :  { %1138 = vmatprep.subr.bf16.mxu1 %v1947_v38  ;;  %v2002_v38 = vld [vmem:[#allocation6 + $0x370] ss:$8 sps:$4 sm:$0xff]   ;;  %v2058_v20 = vld [vmem:[#allocation6 + $0x3e4] ss:$8 sps:$4 sm:$0xff]   ;;  %v2369_v30 = vrot.slane %v2106_v19, %v2333_v56  ;;  %v2061_v31 = vld [vmem:[#allocation6 + $0x2d4] ss:$8 sps:$4 sm:$0xff]  }
  0x61   :  { %v2064_v32 = vld [vmem:[#allocation6 + $0x3d4] ss:$8 sps:$4 sm:$0xff]   ;;  %v2250_v19 = vmov 0  }
  0x62   :  { %1096 = vmatpush2.bf16.msra.mxu0 %v1949_v39  ;;  %v2007_v39 = vld [vmem:[#allocation6 + $0x264] ss:$8 sps:$4 sm:$0xff]   ;;  %v2117_v12 = vld [vmem:[#allocation8 + $0x50] sm:$0xff]   ;;  %1889 = vset.pattern.permute.xlu0 %v2250_v19 }
  0x63   :  { %1139 = vmatpush2.bf16.msra.mxu1 %v1950_v43  ;;  %1097 = vmatprep.subr.bf16.mxu0 %v1951_v44  ;;  %v2013_v43 = vld [vmem:[#allocation6 + $0x254] ss:$8 sps:$4 sm:$0xff]  }
  0x64   :  { %1140 = vmatprep.subr.bf16.mxu1 %v1953_v45  ;;  %v2016_v44 = vld [vmem:[#allocation6 + $0x354] ss:$8 sps:$4 sm:$0xff]   ;;  %v2011_v45 = vld [vmem:[#allocation6 + $0x250] ss:$8 sps:$4 sm:$0xff]  }
  0x66   :  { %1098 = vmatpush2.bf16.msra.mxu0 %v1955_v46  ;;  %v2014_v46 = vld [vmem:[#allocation6 + $0x350] ss:$8 sps:$4 sm:$0xff]  }
  0x67   :  { %1141 = vmatpush2.bf16.msra.mxu1 %v1956_v47  ;;  %1099 = vmatprep.subr.bf16.mxu0 %v1957_v50  ;;  %v2019_v47 = vld [vmem:[#allocation6 + $0x244] ss:$8 sps:$4 sm:$0xff]   ;;  %v2017_v50 = vld [vmem:[#allocation6 + $0x240] ss:$8 sps:$4 sm:$0xff]  }
  0x68   :  { %1142 = vmatprep.subr.bf16.mxu1 %v1959_v51  ;;  %v2020_v51 = vld [vmem:[#allocation6 + $0x340] ss:$8 sps:$4 sm:$0xff]  }
  0x6a   :  { %1100 = vmatpush2.bf16.msra.mxu0 %v1961_v52  ;;  %v2025_v52 = vld [vmem:[#allocation6 + $0x234] ss:$8 sps:$4 sm:$0xff]  }
  0x6b   :  { %1143 = vmatpush2.bf16.msra.mxu1 %v1962_v53  ;;  %1101 = vmatprep.subr.bf16.mxu0 %v1963_v54  ;;  %v2028_v53 = vld [vmem:[#allocation6 + $0x334] ss:$8 sps:$4 sm:$0xff]   ;;  %v2023_v54 = vld [vmem:[#allocation6 + $0x230] ss:$8 sps:$4 sm:$0xff]  }
  0x6c   :  { %1144 = vmatprep.subr.bf16.mxu1 %v1965_v55  ;;  %v2026_v55 = vld [vmem:[#allocation6 + $0x330] ss:$8 sps:$4 sm:$0xff]  }
  0x6e   :  { %1102 = vmatpush2.bf16.msra.mxu0 %v1967_v59  ;;  %v2029_v59 = vld [vmem:[#allocation6 + $0x220] ss:$8 sps:$4 sm:$0xff]  }
  0x6f   :  { %1145 = vmatpush2.bf16.msra.mxu1 %v1968_v60  ;;  %1103 = vmatprep.subr.bf16.mxu0 %v1969_v5  ;;  %v2032_v60 = vld [vmem:[#allocation6 + $0x320] ss:$8 sps:$4 sm:$0xff]   ;;  %v2049_v5 = vld [vmem:[#allocation6 + $0x2f4] ss:$8 sps:$4 sm:$0xff]  }
  0x70   :  { %1146 = vmatprep.subr.bf16.mxu1 %v1971_v9  ;;  %v2047_v9 = vld [vmem:[#allocation6 + $0x2f0] ss:$8 sps:$4 sm:$0xff]  }
  0x72   :  { %1104 = vmatpush2.bf16.msra.mxu0 %v1973_v15  ;;  %v2344_v15 = vrot.slane %v2095_v7, %v2333_v56  ;;  %v2112_v7 = vld [vmem:[#allocation8 + $0x28] sm:$0xff]  }
  0x73   :  { %1147 = vmatpush2.bf16.msra.mxu1 %v1974_v16  ;;  %1105 = vmatprep.subr.bf16.mxu0 %v1975_v18  ;;  %v2347_v16 = vrot.slane %v2097_v8, %v2333_v56  ;;  %v2105_v18 = vld [vmem:[#allocation3 + $0x4c] ss:$16 sps:$4 sm:$0xff]   ;;  %v2113_v8 = vld [vmem:[#allocation8 + $0x60] sm:$0xff]  }
  0x74   :  { %1148 = vmatprep.subr.bf16.mxu1 %v1977_v21  ;;  %v2350_v21 = vrot.slane %v2099_v11, %v2333_v56  ;;  %v2116_v11 = vld [vmem:[#allocation8 + $0x18] sm:$0xff]  }
  0x76   :  { %1106 = vmatpush2.bf16.msra.mxu0 %v1979_v23  ;;  %v2356_v23 = vrot.slane %v2103_v13, %v2333_v56  ;;  %v270_v29 = vcombine.high %v2350_v21, %v2353_v22  ;;  %v2118_v13 = vld [vmem:[#allocation8 + $0x10] sm:$0xff]  }
  0x77   :  { %1149 = vmatpush2.bf16.msra.mxu1 %v1980_v24  ;;  %1107 = vmatprep.subr.bf16.mxu0 %v1981_v25  ;;  %v198_v24 = vcombine.high %v2344_v15, %v2347_v16  ;;  %v2361_v25 = vrot.slane %v2104_v17, %v2333_v56  ;;  %v2122_v17 = vld [vmem:[#allocation8] sm:$0xff]  }
  0x78   :  { %1150 = vmatprep.subr.bf16.mxu1 %v1983_v26  ;;  %v2364_v26 = vrot.slane %v2105_v18, %v2333_v56  ;;  %v2070_v56 = vld [vmem:[#allocation6 + $0x3c4] ss:$8 sps:$4 sm:$0xff]  }
  0x79   :  { %v1287_v18 = vld [vmem:[%s2428_s1] sm:$0xff] }
  0x7a   :  { %1108 = vmatpush2.bf16.msra.mxu0 %v1985_v27  ;;  %v2053_v27 = vld [vmem:[#allocation6 + $0x2e0] ss:$8 sps:$4 sm:$0xff]   ;;  %1292 = vperm.xlu0 %1889, %v1287_v18  }
  0x7b   :  { %1151 = vmatpush2.bf16.msra.mxu1 %v1986_v28  ;;  %1163 = vmatprep.subr.bf16.mxu0 %v2001_v33  ;;  %v2056_v28 = vld [vmem:[#allocation6 + $0x3e0] ss:$8 sps:$4 sm:$0xff]   ;;  %v200_v33 = vcombine.high %v2356_v23, %v2361_v25 }
  0x7c   :  { %1206 = vmatprep.subr.bf16.mxu1 %v2004_v34  ;;  %v294_v34 = vpack.c.bf16 %v270_v29, %v198_v24  ;;  %v2124_v24 = vld [vmem:[#allocation9 + $0x30] sm:$0xff]   ;;  %v433_v29 = vsub.s32 1, %v2330_v49 }
  0x7d   :  { %1110 = vmatmul.mubr.bf16.vlgmr.msra.gmra.mxu0 %v289_v35  ;;  %v272_v35 = vcombine.high %v2364_v26, %v2369_v30 }
  0x7e   :  { %1153 = vmatmul.mubr.bf16.vlgmr.msra.gmra.mxu1 %v291_v36  ;;  %1164 = vmatpush1.bf16.msra.mxu0 %v1999_v37  ;;  %v2059_v36 = vld [vmem:[#allocation6 + $0x2d0] ss:$8 sps:$4 sm:$0xff]  }
  0x7f   :  { %1207 = vmatpush1.bf16.msra.mxu1 %v2002_v38  ;;  %1165 = vmatprep.subr.bf16.mxu0 %v2007_v39  ;;  %v2062_v37 = vld [vmem:[#allocation6 + $0x3d0] ss:$8 sps:$4 sm:$0xff]   ;;  %v296_v38 = vpack.c.bf16 %v272_v35, %v200_v33  ;;  %v2067_v39 = vld [vmem:[#allocation6 + $0x2c4] ss:$8 sps:$4 sm:$0xff]  }
  0x80   :  { %1208 = vmatprep.subr.bf16.mxu1 %v2010_v40  ;;  %1195 = vmatprep.mubr.bf16.mxu0 %v294_v34  ;;  %v2065_v40 = vld [vmem:[#allocation6 + $0x2c0] ss:$8 sps:$4 sm:$0xff]  }
  0x81   :  { %1238 = vmatprep.mubr.bf16.mxu1 %v296_v38 }
  0x82   :  { %1166 = vmatpush1.bf16.msra.mxu0 %v2005_v41  ;;  %v2068_v41 = vld [vmem:[#allocation6 + $0x3c0] ss:$8 sps:$4 sm:$0xff]  }
  0x83   :  { %1209 = vmatpush1.bf16.msra.mxu1 %v2008_v42  ;;  %1167 = vmatprep.subr.bf16.mxu0 %v2013_v43  ;;  %v2073_v42 = vld [vmem:[#allocation6 + $0x2b4] ss:$8 sps:$4 sm:$0xff]  }
  0x84   :  { %1210 = vmatprep.subr.bf16.mxu1 %v2016_v44  ;;  %v2076_v43 = vld [vmem:[#allocation6 + $0x3b4] ss:$8 sps:$4 sm:$0xff]   ;;  %v2071_v44 = vld [vmem:[#allocation6 + $0x2b0] ss:$8 sps:$4 sm:$0xff]  }
  0x86   :  { %1168 = vmatpush1.bf16.msra.mxu0 %v2011_v45  ;;  %v2074_v45 = vld [vmem:[#allocation6 + $0x3b0] ss:$8 sps:$4 sm:$0xff]  }
  0x87   :  { %1211 = vmatpush1.bf16.msra.mxu1 %v2014_v46  ;;  %1169 = vmatprep.subr.bf16.mxu0 %v2019_v47  ;;  %v2079_v46 = vld [vmem:[#allocation6 + $0x2a4] ss:$8 sps:$4 sm:$0xff]  }
  0x88   :  { %1212 = vmatprep.subr.bf16.mxu1 %v2022_v48  ;;  %v2082_v47 = vld [vmem:[#allocation6 + $0x3a4] ss:$8 sps:$4 sm:$0xff]   ;;  %v2077_v48 = vld [vmem:[#allocation6 + $0x2a0] ss:$8 sps:$4 sm:$0xff]  }
  0x8a   :  { %1170 = vmatpush1.bf16.msra.mxu0 %v2017_v50  ;;  %v2080_v50 = vld [vmem:[#allocation6 + $0x3a0] ss:$8 sps:$4 sm:$0xff]  }
  0x8b   :  { %1213 = vmatpush1.bf16.msra.mxu1 %v2020_v51  ;;  %1171 = vmatprep.subr.bf16.mxu0 %v2025_v52  ;;  %v2085_v51 = vld [vmem:[#allocation6 + $0x294] ss:$8 sps:$4 sm:$0xff]  }
  0x8c   :  { %1214 = vmatprep.subr.bf16.mxu1 %v2028_v53  ;;  %v2088_v52 = vld [vmem:[#allocation6 + $0x394] ss:$8 sps:$4 sm:$0xff]   ;;  %v2083_v53 = vld [vmem:[#allocation6 + $0x290] ss:$8 sps:$4 sm:$0xff]  }
  0x8e   :  { %1172 = vmatpush1.bf16.msra.mxu0 %v2023_v54  ;;  %v2086_v54 = vld [vmem:[#allocation6 + $0x390] ss:$8 sps:$4 sm:$0xff]  }
  0x8f   :  { %1215 = vmatpush1.bf16.msra.mxu1 %v2026_v55  ;;  %1173 = vmatprep.subr.bf16.mxu0 %v2031_v57  ;;  %v2091_v55 = vld [vmem:[#allocation6 + $0x284] ss:$8 sps:$4 sm:$0xff]  }
  0x90   :  { %1216 = vmatprep.subr.bf16.mxu1 %v2034_v58  ;;  %v2094_v57 = vld [vmem:[#allocation6 + $0x384] ss:$8 sps:$4 sm:$0xff]   ;;  %v197_v58 = vcombine.low %v2344_v15, %v2347_v16 }
  0x91   :  { %v2120_v15 = vld [vmem:[#allocation8 + $0x8] sm:$0xff]   ;;  %v2121_v16 = vld [vmem:[#allocation8 + $0x40] sm:$0xff]  }
  0x92   :  { %1174 = vmatpush1.bf16.msra.mxu0 %v2029_v59  ;;  %v269_v59 = vcombine.low %v2350_v21, %v2353_v22  ;;  %v2123_v21 = vld [vmem:[#allocation9 + $0x38] sm:$0xff]   ;;  %v1288_v22 = vld [vmem:[%s2428_s1 + $0x8] sm:$0xff] }
  0x93   :  { %1217 = vmatpush1.bf16.msra.mxu1 %v2032_v60  ;;  %1175 = vmatprep.subr.bf16.mxu0 %v2037_v61  ;;  %v199_v60 = vcombine.low %v2356_v23, %v2361_v25  ;;  %v271_v61 = vcombine.low %v2364_v26, %v2369_v30  ;;  %v2252_v23 = vmov 0.0   ;;  %v1589_v25 = vld [vmem:[#allocation2] sm:$0x1]  ;;  %v2125_v26 = vld [vmem:[#allocation9 + $0x28] sm:$0xff]  }
  0x94   :  { %1218 = vmatprep.subr.bf16.mxu1 %v2040_v62  ;;  %v2089_v62 = vld [vmem:[#allocation6 + $0x280] ss:$8 sps:$4 sm:$0xff]   ;;  %1297 = vperm.xlu0 %1889, %v1288_v22  }
  0x95   :  { %v425_v30 = vld [vmem:[%s2430_s3] sm:$0x3] }
  0x96   :  { %1176 = vmatpush1.bf16.msra.mxu0 %v2035_v63  ;;  %v2092_v63 = vld [vmem:[#allocation6 + $0x380] ss:$8 sps:$4 sm:$0xff]   ;;  %v434_v34 = vrot.slane %v425_v30, %v433_v29  ;;  %v1804_v29 = vld [vmem:[%s2433_s6] ss:$0 sm:$0xff] }
  0x97   :  { %1219 = vmatpush1.bf16.msra.mxu1 %v2038_v0  ;;  %1177 = vmatprep.subr.bf16.mxu0 %v2043_v1  ;;  %v293_v0 = vpack.c.bf16 %v269_v59, %v197_v58  ;;  %v295_v1 = vpack.c.bf16 %v271_v61, %v199_v60 }
  0x98   :  { %1220 = vmatprep.subr.bf16.mxu1 %v2046_v2  ;;  %v2107_v2 = vld [vmem:[#allocation8 + $0x78] sm:$0xff]   ;;  %1592 = vperm.xlu0 %1889, %v1589_v25  }
  0x9a   :  { %1178 = vmatpush1.bf16.msra.mxu0 %v2041_v3  ;;  %v2108_v3 = vld [vmem:[#allocation8 + $0x38] sm:$0xff]  }
  0x9b   :  { %1221 = vmatpush1.bf16.msra.mxu1 %v2044_v4  ;;  %1179 = vmatprep.subr.bf16.mxu0 %v2049_v5  ;;  %v2109_v4 = vld [vmem:[#allocation8 + $0x70] sm:$0xff]  }
  0x9c   :  { %1222 = vmatprep.subr.bf16.mxu1 %v2052_v6  ;;  %v2110_v5 = vld [vmem:[#allocation8 + $0x30] sm:$0xff]   ;;  %v2111_v6 = vld [vmem:[#allocation8 + $0x68] sm:$0xff]  }
  0x9e   :  { %1180 = vmatpush2.bf16.msra.mxu0 %v2047_v9  ;;  %v2114_v9 = vld [vmem:[#allocation8 + $0x20] sm:$0xff]  }
  0x9f   :  { %1223 = vmatpush2.bf16.msra.mxu1 %v2050_v10  ;;  %1181 = vmatprep.subr.bf16.mxu0 %v2055_v14  ;;  %v2115_v10 = vld [vmem:[#allocation8 + $0x58] sm:$0xff]   ;;  %v2119_v14 = vld [vmem:[#allocation8 + $0x48] sm:$0xff]  }
  0xa0   :  { %1224 = vmatprep.subr.bf16.mxu1 %v2058_v20  ;;  %v2251_v20 = vmov 1  }
  0xa1   :  { %1890 = vset.pattern.permute.xlu1 %v2251_v20 }
  0xa2   :  { %1182 = vmatpush2.bf16.msra.mxu0 %v2053_v27  ;;  %1445 = vperm.xlu1 %1890, %v1287_v18  }
  0xa3   :  { %1225 = vmatpush2.bf16.msra.mxu1 %v2056_v28  ;;  %1183 = vmatprep.subr.bf16.mxu0 %v2061_v31  ;;  %v429_v31 = vsub.s32 0, %v2330_v49 }
  0xa4   :  { %1226 = vmatprep.subr.bf16.mxu1 %v2064_v32 }
  0xa5   :  { %v430_v35 = vrot.slane %v425_v30, %v429_v31 }
  0xa6   :  { %1184 = vmatpush2.bf16.msra.mxu0 %v2059_v36  ;;  %1449 = vperm.xlu1 %1890, %v1288_v22  }
  0xa7   :  { %1227 = vmatpush2.bf16.msra.mxu1 %v2062_v37  ;;  %1185 = vmatprep.subr.bf16.mxu0 %v2067_v39 }
  0xa8   :  { %1228 = vmatprep.subr.bf16.mxu1 %v2070_v56 }
  0xaa   :  { %1186 = vmatpush2.bf16.msra.mxu0 %v2065_v40 }
  0xab   :  { %1229 = vmatpush2.bf16.msra.mxu1 %v2068_v41  ;;  %1187 = vmatprep.subr.bf16.mxu0 %v2073_v42 }
  0xac   :  { %1230 = vmatprep.subr.bf16.mxu1 %v2076_v43 }
  0xae   :  { %1188 = vmatpush2.bf16.msra.mxu0 %v2071_v44 }
  0xaf   :  { %1231 = vmatpush2.bf16.msra.mxu1 %v2074_v45  ;;  %1189 = vmatprep.subr.bf16.mxu0 %v2079_v46 }
  0xb0   :  { %1232 = vmatprep.subr.bf16.mxu1 %v2082_v47 }
  0xb2   :  { %1190 = vmatpush2.bf16.msra.mxu0 %v2077_v48 }
  0xb3   :  { %1233 = vmatpush2.bf16.msra.mxu1 %v2080_v50  ;;  %1191 = vmatprep.subr.bf16.mxu0 %v2085_v51 }
  0xb4   :  { %1234 = vmatprep.subr.bf16.mxu1 %v2088_v52 }
  0xb6   :  { %1192 = vmatpush2.bf16.msra.mxu0 %v2083_v53 }
  0xb7   :  { %1235 = vmatpush2.bf16.msra.mxu1 %v2086_v54  ;;  %1193 = vmatprep.subr.bf16.mxu0 %v2091_v55 }
  0xb8   :  { %1236 = vmatprep.subr.bf16.mxu1 %v2094_v57 }
  0xba   :  { %1194 = vmatpush2.bf16.msra.mxu0 %v2089_v62 }
  0xbb   :  { %1237 = vmatpush2.bf16.msra.mxu1 %v2092_v63  ;;  %1814 = vmatprep.subr.bf16.mxu0 %v2107_v2 }
  0xbc   :  { %1847 = vmatprep.subr.bf16.mxu1 %v2252_v23 }
  0xbd   :  { %1196 = vmatmul.mubr.bf16.vlgmr.msra.gmra.mxu0 %v293_v0 }
  0xbe   :  { %1239 = vmatmul.mubr.bf16.vlgmr.msra.gmra.mxu1 %v295_v1  ;;  %1815 = vmatpush3.bf16.msra.mxu0 %v2108_v3 }
  0xbf   :  { %1816 = vmatprep.subr.bf16.mxu0 %v2109_v4  ;;  %1848 = vmatpush3.bf16.msra.mxu1 %v2123_v21 }
  0xc0   :  { %1849 = vmatprep.subr.bf16.mxu1 %v2252_v23  ;;  %1863 = vmatprep.mubr.msk.bf16.mxu1 %vm2253_vm0, %v2252_v23 }
  0xc2   :  { %1817 = vmatpush3.bf16.msra.mxu0 %v2110_v5 }
  0xc3   :  { %1818 = vmatprep.subr.bf16.mxu0 %v2111_v6  ;;  %1850 = vmatpush3.bf16.msra.mxu1 %v2124_v24 }
  0xc4   :  { %1851 = vmatprep.subr.bf16.mxu1 %v2252_v23 }
  0xc6   :  { %1819 = vmatpush3.bf16.msra.mxu0 %v2112_v7  ;;  %v2126_v7 = vld [vmem:[#allocation9 + $0x20] sm:$0xff]  }
  0xc7   :  { %1820 = vmatprep.subr.bf16.mxu0 %v2113_v8  ;;  %1852 = vmatpush3.bf16.msra.mxu1 %v2125_v26  ;;  %v2127_v8 = vld [vmem:[#allocation9 + $0x18] sm:$0xff]  }
  0xc8   :  { %1853 = vmatprep.subr.bf16.mxu1 %v2252_v23 }
  0xca   :  { %1821 = vmatpush3.bf16.msra.mxu0 %v2114_v9  ;;  %v2128_v9 = vld [vmem:[#allocation9 + $0x10] sm:$0xff]  }
  0xcb   :  { %1822 = vmatprep.subr.bf16.mxu0 %v2115_v10  ;;  %1854 = vmatpush3.bf16.msra.mxu1 %v2126_v7  ;;  %v2129_v10 = vld [vmem:[#allocation9 + $0x8] sm:$0xff]  }
  0xcc   :  { %1855 = vmatprep.subr.bf16.mxu1 %v2252_v23 }
  0xce   :  { %1823 = vmatpush3.bf16.msra.mxu0 %v2116_v11  ;;  %v2130_v11 = vld [vmem:[#allocation9] sm:$0xff]  }
  0xcf   :  { %1824 = vmatprep.subr.bf16.mxu0 %v2117_v12  ;;  %1856 = vmatpush3.bf16.msra.mxu1 %v2127_v8  ;;  %v1786_v12 = vld [vmem:[%s2432_s5] ss:$0 sm:$0xff] }
  0xd0   :  { %1857 = vmatprep.subr.bf16.mxu1 %v2252_v23 }
  0xd2   :  { %1825 = vmatpush3.bf16.msra.mxu0 %v2118_v13 }
  0xd3   :  { %1826 = vmatprep.subr.bf16.mxu0 %v2119_v14  ;;  %1858 = vmatpush3.bf16.msra.mxu1 %v2128_v9  ;;  %v1803_v14 = vld [vmem:[%s2432_s5 + $0x1] ss:$0 sm:$0xff] }
  0xd4   :  { %1859 = vmatprep.subr.bf16.mxu1 %v2252_v23 }
  0xd6   :  { %1827 = vmatpush3.bf16.msra.mxu0 %v2120_v15 }
  0xd7   :  { %1828 = vmatprep.subr.bf16.mxu0 %v2121_v16  ;;  %1860 = vmatpush3.bf16.msra.mxu1 %v2129_v10 }
  0xd8   :  { %1861 = vmatprep.subr.bf16.mxu1 %v2252_v23 }
  0xda   :  { %1829 = vmatpush3.bf16.msra.mxu0 %v2122_v17 }
  0xdb   :  { %1867 = vmatprep.subr.bf16.mxu0 %v2252_v23  ;;  %1862 = vmatpush3.bf16.msra.mxu1 %v2130_v11 }
  0xf5   :  { %v1293_v13 = vpop.permute.xlu0 %1292 }
  0xf6   :  { %v1304_v17 = vmul.f32 %v1786_v12, %v1293_v13 }
 0x10f   :  { %v1298_v22 = vpop.permute.xlu0 %1297 }
 0x110   :  { %v1305_v26 = vmul.f32 %v1786_v12, %v1298_v22 }
 0x11d   :  { %v1446_v15 = vpop.permute.xlu1 %1445 }
 0x11e   :  { %v1456_v19 = vmul.f32 %v1803_v14, %v1446_v15 }
 0x121   :  { %v1450_v25 = vpop.permute.xlu1 %1449 }
 0x122   :  { %v1457_v30 = vmul.f32 %v1803_v14, %v1450_v25 }
 0x13d   :  { %v1111_v27 = vpop.f32.mrf.mxu0 }
 0x13e   :  { %v1154_v28 = vpop.f32.mrf.mxu1  ;;  %v1112_v39 = vadd.f32 %v1111_v27, %v430_v35 }
 0x13f   :  { %v1113_v32 = vpop.f32.mrf.mxu0 }
 0x140   :  { %v1156_v33 = vpop.f32.mrf.mxu1  ;;  %v1114_v38 = vadd.f32 %v1113_v32, %v434_v34  ;;  %v1155_v46 = vadd.f32 %v1154_v28, %v1112_v39  ;;  %v1805_v39 = vld [vmem:[%s2435_s8] ss:$0 sm:$0xff]  ;;  %s2211_s8 = scalar_lea.vmem %s1648_s15, 16 }
 0x141   :  { %v1115_v36 = vpop.f32.mrf.mxu0  ;;  %p2212_p6 = scmp.ne.s32.totalorder %s1648_s15, %s2211_s8  ;;  %p2217_p8 = scmp.lt.s32.totalorder %s2215_s2, %s2211_s8 }
 0x142   :  { %v1158_v37 = vpop.f32.mrf.mxu1  ;;  %v1116_v41 = vadd.f32 %v1115_v36, %v430_v35  ;;  %v1157_v44 = vadd.f32 %v1156_v33, %v1114_v38 }
 0x143   :  { %v1117_v56 = vpop.f32.mrf.mxu0  ;;  %p2218_p9 = por %p2217_p8, %p2216_p7 }
 0x144   :  { %v1160_v40 = vpop.f32.mrf.mxu1  ;;  %v1118_v45 = vadd.f32 %v1117_v56, %v434_v34  ;;  %v1159_v50 = vadd.f32 %v1158_v37, %v1116_v41 }
 0x145   :  { %p2219_p10 = pnand %p2218_p9, %p2212_p6 }
 0x146   :  { %v1161_v55 = vadd.f32 %v1160_v40, %v1118_v45 }
 0x17d   :  { %v1197_v42 = vpop.f32.mrf.mxu0 }
 0x17e   :  { %v1240_v43 = vpop.f32.mrf.mxu1  ;;  %v1198_v52 = vadd.f32 %v1197_v42, %v1155_v46 }
 0x17f   :  { %v1199_v47 = vpop.f32.mrf.mxu0 }
 0x180   :  { %v1242_v48 = vpop.f32.mrf.mxu1  ;;  %v1200_v51 = vadd.f32 %v1199_v47, %v1157_v44  ;;  %v1241_v62 = vadd.f32 %v1240_v43, %v1198_v52 }
 0x181   :  { %v1201_v53 = vpop.f32.mrf.mxu0 }
 0x182   :  { %v1244_v54 = vpop.f32.mrf.mxu1  ;;  %v1202_v57 = vadd.f32 %v1201_v53, %v1159_v50  ;;  %v1243_v59 = vadd.f32 %v1242_v48, %v1200_v51  ;;  %v1249_v4 = vmax.f32 %v1241_v62, 0.0  ;;  %v1586_v48 = vld [vmem:[%s2436_s9] sm:$0x1]  ;;  %v1593_v51 = vpop.permute.xlu0 %1592 }
 0x183   :  { %v1203_v58 = vpop.f32.mrf.mxu0  ;;  %v1587_v50 = vpack.c.bf16 %v1586_v48, %v1586_v48  ;;  %v1598_v52 = vrot.slane %v1593_v51, %v429_v31 }
 0x184   :  { %v1245_v60 = vadd.f32 %v1244_v54, %v1202_v57  ;;  %v1204_v61 = vadd.f32 %v1203_v58, %v1161_v55  ;;  %v1246_v63 = vpop.f32.mrf.mxu1  ;;  %v1250_v2 = vmax.f32 %v1243_v59, 0.0 }
 0x186   :  { %v1247_v0 = vadd.f32 %v1246_v63, %v1204_v61  ;;  %v1251_v1 = vmax.f32 %v1245_v60, 0.0 }
 0x188   :  { %v1252_v3 = vmax.f32 %v1247_v0, 0.0  ;;  %v1253_v6 = vpack.c.bf16 %v1251_v1, %v1249_v4 }
 0x18a   :  { %v1254_v5 = vpack.c.bf16 %v1252_v3, %v1250_v2 }
 0x18c   :  { %1434 = vmatprep.mubr.bf16.mxu0 %v1254_v5 }
 0x18d   :  { %1435 = vmatmul.mubr.bf16.vlgmr.msra.gmra.mxu0 %v1253_v6 }
 0x18e   :  { %1869 = vmatprep.mubr.msk.bf16.mxu0 %vm2253_vm0, %v2252_v23 }
 0x24d   :  { %v1830_v16 = vpop.f32.mrf.mxu0 }
 0x24f   :  { %v1831_v18 = vpop.f32.mrf.mxu0 }
 0x250   :  { %v1832_v20 = vadd.f32 %v1831_v18, %v1830_v16 }
 0x251   :  { %v1833_v21 = vpop.f32.mrf.mxu0 }
 0x252   :  { %v1437_v24 = vadd.f32 %v1832_v20, %v1304_v17 }
 0x253   :  { %v1834_v23 = vpop.f32.mrf.mxu0 }
 0x254   :  { %v1458_v27 = vadd.f32 %v1456_v19, %v1437_v24  ;;  %v1835_v28 = vadd.f32 %v1834_v23, %v1833_v21 }
 0x256   :  { %v1440_v32 = vadd.f32 %v1835_v28, %v1305_v26  ;;  %v1467_v33 = vadd.f32 %v1804_v29, %v1458_v27 }
 0x258   :  { %v1459_v34 = vadd.f32 %v1457_v30, %v1440_v32  ;;  %v1469_v36 = vmax.f32 %v1467_v33, 0.0 }
 0x25a   :  { %v1468_v35 = vadd.f32 %v1804_v29, %v1459_v34 }
 0x25c   :  { %v1470_v37 = vmax.f32 %v1468_v35, 0.0 }
 0x25e   :  { %v1471_v38 = vpack.c.bf16 %v1470_v37, %v1469_v36 }
 0x260   :  { %1864 = vmatmul.mubr.bf16.vlgmr.msra.gmra.mxu1 %v1471_v38 }
 0x320   :  { %v1577_v56 = vpop.f32.mrf.mxu1 }
 0x321   :  { %v1578_v41 = vadd.f32 %v1805_v39, %v1577_v56 }
 0x322   :  { %v1865_v40 = vpop.f32.mrf.mxu1 }
 0x323   :  { %v1584_v45 = vmax.f32 %v1578_v41, 0.0 }
 0x324   :  { %v1580_v42 = vpop.f32.mrf.mxu1 }
 0x325   :  { %v1581_v43 = vadd.f32 %v1805_v39, %v1580_v42 }
 0x326   :  { %v1866_v44 = vpop.f32.mrf.mxu1 }
 0x327   :  { %v1585_v46 = vmax.f32 %v1581_v43, 0.0 }
 0x329   :  { %v1588_v47 = vpack.c.bf16 %v1585_v46, %v1584_v45 }
 0x32b   :  { %1868 = vmatpush3.bf16.xpose.msra.mxu0 %v1588_v47 }
 0x332   :  { %1870 = vmatmul.mubr.bf16.vlgmr.msra.gmra.mxu0 %v1587_v50 }
 0x3f2   :  { %v1633_v53 = vpop.f32.mrf.mxu0 }
 0x3f3   :  { %v1634_v54 = vadd.f32 %v1633_v53, %v1598_v52 }
 0x3f4   :  { %v1871_v55 = vpop.f32.mrf.mxu0 }
 0x3f5   :  { %1640 = vst.msk [vmem:[#allocation11] sm:$0x1] %vm1639_vm1, %v1634_v54 }
 0x3f6   :  { %v1636_v57 = vpop.f32.mrf.mxu0 }
 0x3f7   :  { %2222 = shalt.err (!%p2219_p10)
}
 0x3f8   :  { %1650 = dma.vmem_to_hbm [thread:$0]  %s1648_s15, 16, %s2438_s11, [#allocation5]   ;;  %v1872_v49 = vpop.f32.mrf.mxu0 }
 0x3f9   :  { %2237 = dma.done.wait [#allocation5], 16  }
 0x3fa   :  { %2238 = vsyncadd [#allocation5], 4294967280 }
 0x3fb   :  { %1654 = vsyncpa [#allocation4], 1 }
 0x3fc   :  { %1655 = vsyncpa [#allocation7], 1 }
 0x3fd   :  { %1656 = vsyncpa [#allocation10], 1 }
 0x3fe   :  { %1657 = vsyncpa [#allocation5], 1 }

</bundles_post_ra>
